<compile_context>
chip_gen: v6e
topology: v6e:2x2x1
jax: 0.10.0
libtpu: 0.0.40
codegen_flags: <defaults>
</compile_context>

<pallas_src>
import jax
import jax.numpy as jnp
import numpy as np
from jax import lax
from jax.experimental import pallas as pl
from jax.experimental.pallas import tpu as pltpu


# ----------------------------- Pallas kernel ------------------------------ #
def _bilstm_kernel(len_smem,    # (B,)      i32 SMEM  (scalar prefetch, sorted desc)
                   len_ref,     # (B, 1)    i32 VMEM  per-sequence lengths
                   xgf_ref,     # (Tc,B,4H) bf16      x@W_ih for forward chunk c
                   xgb_ref,     # (Tc,B,4H) bf16      x@W_ih for backward chunk nC-1-c
                   whh_ref,     # (2,H,4H)  bf16      hidden weights, both directions
                   b_ref,       # (2,4H)    f32       bias (bias_ih + bias_hh)
                   outf_ref,    # (Tc,B,H)  f32       forward hidden states
                   outb_ref,    # (Tc,B,H)  f32       backward hidden states
                   h_sc, c_sc): # (2,B,H)   f32       recurrent state (persists)
    Tc = xgf_ref.shape[0]
    H = h_sc.shape[-1]
    c_idx = pl.program_id(0)
    nC = pl.num_programs(0)

    # h0 / c0 are zero Parameters in the PyTorch module.
    @pl.when(c_idx == 0)
    def _init():
        h_sc[...] = jnp.zeros_like(h_sc)
        c_sc[...] = jnp.zeros_like(c_sc)

    base_f = c_idx * Tc                 # global t offset of the forward chunk
    base_b = (nC - 1 - c_idx) * Tc      # global t offset of the backward chunk
    max_len = len_smem[0]               # lengths sorted descending

    lens = len_ref[...]                 # (B, 1) i32
    whh = whh_ref[...]                  # (2, H, 4H) bf16, resident across the chunk
    bias = b_ref[...][:, None, :]       # (2, 1, 4H) f32, hoisted out of the loop

    def step(s, carry):
        tl_f = s
        tl_b = Tc - 1 - s               # backward iterates its chunk in reverse
        t_f = base_f + tl_f
        t_b = base_b + tl_b

        # Both directions' h @ W_hh^T issued as one batched MXU op (bf16 in,
        # f32 accumulation) — interleaves the two serial dependency chains.
        rec = jnp.einsum("kbh,khg->kbg", h_sc[...].astype(jnp.bfloat16), whh,
                         preferred_element_type=jnp.float32)        # (2,B,4H) f32
        xg = jnp.stack([xgf_ref[tl_f], xgb_ref[tl_b]], axis=0)      # (2,B,4H) bf16
        gates = xg.astype(jnp.float32) + rec + bias                 # (2,B,4H) f32

        # PyTorch gate order: i, f, g, o (gate math stays f32 — EUP/VPU).
        i_g = jax.nn.sigmoid(gates[..., 0 * H:1 * H])
        f_g = jax.nn.sigmoid(gates[..., 1 * H:2 * H])
        g_g = jnp.tanh(gates[..., 2 * H:3 * H])
        o_g = jax.nn.sigmoid(gates[..., 3 * H:4 * H])

        c_new = f_g * c_sc[...] + i_g * g_g
        h_new = o_g * jnp.tanh(c_new)

        # Packed-sequence mask: masked steps freeze the state and emit 0.
        valid = jnp.stack([t_f < lens, t_b < lens], axis=0)         # (2,B,1) bool
        h_sc[...] = jnp.where(valid, h_new, h_sc[...])
        c_sc[...] = jnp.where(valid, c_new, c_sc[...])

        out = jnp.where(valid, h_new, 0.0)
        outf_ref[tl_f] = out[0].astype(outf_ref.dtype)
        outb_ref[tl_b] = out[1].astype(outb_ref.dtype)
        return carry

    # Skip chunks that are fully padded for BOTH directions (uses the
    # scalar-prefetched lengths); the skipped output blocks must still be zeroed.
    has_work = jnp.logical_or(base_f < max_len, base_b < max_len)

    @pl.when(has_work)
    def _run():
        # Bounded unroll: keeps LLO scheduling visibility without the code-size /
        # vreg-pressure blow-up of a full unroll at production T.
        lax.fori_loop(0, Tc, step, 0, unroll=min(Tc, 8))

    @pl.when(jnp.logical_not(has_work))
    def _skip():
        outf_ref[...] = jnp.zeros_like(outf_ref)
        outb_ref[...] = jnp.zeros_like(outb_ref)


# ------------------------------- Wrapper ----------------------------------- #
def lstm_encoder_forward(x, lengths, params, max_length, time_chunk=None):
    """Equivalent of LSTMEncoder.forward.

    x: (B, max_length, input_dim) batch_first, lengths: (B,) sorted descending.
    params: {"w_ih": (2, D, 4H), "w_hh": (2, H, 4H), "b": (2, 4H)}
            (PyTorch weights transposed; b = bias_ih + bias_hh per direction).
    Returns (B, max_length, 2*hidden_dim) float32."""
    B, T, D = x.shape
    assert T == max_length
    H = params["w_hh"].shape[1]

    Tc = time_chunk if time_chunk is not None else min(T, 128)
    assert T % Tc == 0, "max_length must be a multiple of the time chunk"
    nC = T // Tc

    w_ih = params["w_ih"].astype(jnp.bfloat16)           # (2, D, 4H)
    w_hh = params["w_hh"].astype(jnp.bfloat16)           # (2, H, 4H)
    bias = params["b"].astype(jnp.float32)               # (2, 4H)

    # Hoisted input projection for all timesteps / both directions, emitted
    # time-major and kept bf16 (halves xg HBM traffic and VMEM footprint).
    # Bias is added in-kernel in f32 -> no extra HBM pass over the big xg tensor.
    xg = jnp.einsum("btd,kdg->ktbg", x.astype(jnp.bfloat16), w_ih)  # (2,T,B,4H) bf16

    lengths_i32 = lengths.astype(jnp.int32)
    len2d = lengths_i32.reshape(B, 1)

    grid_spec = pltpu.PrefetchScalarGridSpec(
        num_scalar_prefetch=1,                # lengths -> SMEM
        grid=(nC,),                           # streamed time chunks (sequential)
        in_specs=[
            pl.BlockSpec((B, 1), lambda c, lens: (0, 0)),                         # lengths (VMEM)
            pl.BlockSpec((None, Tc, B, 4 * H), lambda c, lens: (0, c, 0, 0)),     # xg, fwd chunk c
            pl.BlockSpec((None, Tc, B, 4 * H),
                         lambda c, lens: (1, nC - 1 - c, 0, 0)),                  # xg, bwd chunk nC-1-c
            pl.BlockSpec((2, H, 4 * H), lambda c, lens: (0, 0, 0)),               # W_hh (resident)
            pl.BlockSpec((2, 4 * H), lambda c, lens: (0, 0)),                     # bias (resident)
        ],
        out_specs=[
            pl.BlockSpec((Tc, B, H), lambda c, lens: (c, 0, 0)),                  # forward out
            pl.BlockSpec((Tc, B, H), lambda c, lens: (nC - 1 - c, 0, 0)),         # backward out
        ],
        scratch_shapes=[pltpu.VMEM((2, B, H), jnp.float32),       # h state (both dirs)
                        pltpu.VMEM((2, B, H), jnp.float32)],      # c state (both dirs)
    )

    out_f, out_b = pl.pallas_call(
        _bilstm_kernel,
        out_shape=(jax.ShapeDtypeStruct((T, B, H), jnp.float32),
                   jax.ShapeDtypeStruct((T, B, H), jnp.float32)),
        grid_spec=grid_spec,
        compiler_params=pltpu.CompilerParams(
            dimension_semantics=("arbitrary",)),   # recurrence: chunks are sequential
    )(lengths_i32, len2d, xg, xg, w_hh, bias)

    # Epilogue: one concat + one transpose (was 2 transposes + concat).
    return jnp.transpose(jnp.concatenate([out_f, out_b], axis=-1), (1, 0, 2))


# --------------------------- Pure-JAX reference ---------------------------- #
def _ref_scan(xg_tm, lengths, w_hh, b):
    """Masked forward-order LSTM scan over precomputed bf16 input projections."""
    T, B, _ = xg_tm.shape
    H = w_hh.shape[0]
    w_hh_bf = w_hh.astype(jnp.bfloat16)

    def step(carry, inp):
        h, c = carry
        xg_t, t = inp
        gates = (xg_t.astype(jnp.float32)
                 + jnp.dot(h.astype(jnp.bfloat16), w_hh_bf,
                           preferred_element_type=jnp.float32)
                 + b)
        i = jax.nn.sigmoid(gates[:, :H])
        f = jax.nn.sigmoid(gates[:, H:2 * H])
        g = jnp.tanh(gates[:, 2 * H:3 * H])
        o = jax.nn.sigmoid(gates[:, 3 * H:])
        c_new = f * c + i * g
        h_new = o * jnp.tanh(c_new)
        valid = (t < lengths)[:, None]
        return ((jnp.where(valid, h_new, h), jnp.where(valid, c_new, c)),
                jnp.where(valid, h_new, 0.0))

    init = (jnp.zeros((B, H), jnp.float32), jnp.zeros((B, H), jnp.float32))
    _, outs = lax.scan(step, init, (xg_tm, jnp.arange(T)))
    return outs                                                # (T, B, H)


def _ref_encoder(x, lengths, params, max_length):
    B, T, D = x.shape
    # Same bf16 input projection as the wrapper, so the comparison isolates the
    # recurrence / masking / direction logic.
    xg = jnp.einsum("btd,kdg->ktbg", x.astype(jnp.bfloat16),
                    params["w_ih"].astype(jnp.bfloat16))       # (2,T,B,4H) bf16
    L = lengths.astype(jnp.int32)[:, None]                     # (B,1)
    t_idx = jnp.arange(T, dtype=jnp.int32)[None, :]            # (1,T)

    out_f = jnp.transpose(
        _ref_scan(xg[0], lengths, params["w_hh"][0], params["b"][0]), (1, 0, 2))

    # Backward direction via an explicit per-length reversal gather — an
    # independent formulation of the packed-sequence semantics that cross-checks
    # the kernel's in-place reverse chunk iteration.
    rev_idx = jnp.clip(L - 1 - t_idx, 0, T - 1)                # (B,T)
    xg_b = jnp.transpose(xg[1], (1, 0, 2))                     # (B,T,4H)
    xg_b_rev = jnp.take_along_axis(xg_b, rev_idx[:, :, None], axis=1)
    out_b_rev = jnp.transpose(
        _ref_scan(jnp.transpose(xg_b_rev, (1, 0, 2)), lengths,
                  params["w_hh"][1], params["b"][1]), (1, 0, 2))   # (B,T,H)
    out_b = jnp.take_along_axis(out_b_rev, rev_idx[:, :, None], axis=1)
    out_b = jnp.where((t_idx < L)[:, :, None], out_b, 0.0)
    return jnp.concatenate([out_f, out_b], axis=-1)            # (B,T,2H)


# --------------------------------- Main ------------------------------------ #
if __name__ == "__main__":
    # Small shapes consistent with the module: batch=2, seq(max_length)=8,
    # input_dim=16, hidden_dim=32.
    B, T, D, H = 2, 8, 16, 32

    key = jax.random.PRNGKey(0)
    keys = jax.random.split(key, 9)
    bound = 1.0 / float(np.sqrt(H))

    def u(k_, shape):
        return jax.random.uniform(k_, shape, jnp.float32, -bound, bound)

    # PyTorch nn.LSTM parameter shapes (bidirectional): weight_ih (4H, D),
    # weight_hh (4H, H), bias_ih (4H,), bias_hh (4H,) per direction.
    w_ih_f = u(keys[0], (4 * H, D)); w_hh_f = u(keys[1], (4 * H, H))
    b_ih_f = u(keys[2], (4 * H,));   b_hh_f = u(keys[3], (4 * H,))
    w_ih_b = u(keys[4], (4 * H, D)); w_hh_b = u(keys[5], (4 * H, H))
    b_ih_b = u(keys[6], (4 * H,));   b_hh_b = u(keys[7], (4 * H,))

    params = dict(
        w_ih=jnp.stack([w_ih_f.T, w_ih_b.T]),               # (2, D, 4H)
        w_hh=jnp.stack([w_hh_f.T, w_hh_b.T]),               # (2, H, 4H)
        b=jnp.stack([b_ih_f + b_hh_f, b_ih_b + b_hh_b]),    # (2, 4H)
    )

    x = jax.random.normal(keys[8], (B, T, D), jnp.float32)
    # pack_padded_sequence(enforce_sorted=True) requires descending lengths.
    # max(lengths) < max_length exercises the padded-tail masking as well.
    lengths = jnp.array([6, 3], dtype=jnp.int32)

    # time_chunk=4 -> 2 chunks: exercises xg streaming, the reversed backward
    # chunk order, and the state carry across grid iterations.
    out = lstm_encoder_forward(x, lengths, params, T, time_chunk=4)
    out = jax.block_until_ready(out)

    ref = _ref_encoder(x, lengths, params, T)
    assert out.shape == (B, T, 2 * H)
    # bf16 input projections / bf16 matmul operands bound the achievable match;
    # structural bugs (gate order, masking, direction) produce O(0.1) errors.
    np.testing.assert_allclose(np.asarray(out), np.asarray(ref),
                               rtol=2e-2, atol=2e-2)

    print("KERNEL_OK")
</pallas_src>

<mosaic_0001>
module attributes {stable_mosaic.version = 11 : i64} {
  func.func @_bilstm_kernel(%arg0: i32, %arg1: memref<2xi32, #tpu.memory_space<smem>>, %arg2: memref<2x1xi32, #tpu.memory_space<vmem>>, %arg3: memref<1x4x2x128xbf16, #tpu.memory_space<vmem>>, %arg4: memref<1x4x2x128xbf16, #tpu.memory_space<vmem>>, %arg5: memref<2x32x128xbf16, #tpu.memory_space<vmem>>, %arg6: memref<2x128xf32, #tpu.memory_space<vmem>>, %arg7: memref<4x2x32xf32, #tpu.memory_space<vmem>>, %arg8: memref<4x2x32xf32, #tpu.memory_space<vmem>>, %arg9: memref<2x2x32xf32, #tpu.memory_space<vmem>>, %arg10: memref<2x2x32xf32, #tpu.memory_space<vmem>>) attributes {dimension_semantics = [#tpu.dimension_semantics<arbitrary>], iteration_bounds = array<i64: 2>, scalar_prefetch = 1 : i64, scratch_operands = 2 : i64, tpu.core_type = #tpu.core_type<tc>, window_params = [{pipeline_mode = #tpu.pipeline_mode<synchronous>, transform_indices = @transform_0, window_bounds = array<i64: 2, 1>}, {transform_indices = @transform_1, window_bounds = array<i64: 1, 4, 2, 128>}, {transform_indices = @transform_2, window_bounds = array<i64: 1, 4, 2, 128>}, {pipeline_mode = #tpu.pipeline_mode<synchronous>, transform_indices = @transform_3, window_bounds = array<i64: 2, 32, 128>}, {pipeline_mode = #tpu.pipeline_mode<synchronous>, transform_indices = @transform_4, window_bounds = array<i64: 2, 128>}, {transform_indices = @transform_5, window_bounds = array<i64: 4, 2, 32>}, {transform_indices = @transform_6, window_bounds = array<i64: 4, 2, 32>}]} {
    %c0_i32 = arith.constant 0 : i32
    %0 = arith.cmpi eq, %arg0, %c0_i32 : i32
    %1 = arith.extui %0 : i1 to i32
    %c0_i32_0 = arith.constant 0 : i32
    %2 = arith.cmpi ne, %1, %c0_i32_0 : i32
    scf.if %2 {
      %cst = arith.constant 0.000000e+00 : f32
      %19 = vector.broadcast %cst : f32 to vector<2x2x32xf32>
      %c0_11 = arith.constant 0 : index
      %c0_12 = arith.constant 0 : index
      %c0_13 = arith.constant 0 : index
      %20 = vector.load %arg9[%c0_11, %c0_12, %c0_13] : memref<2x2x32xf32, #tpu.memory_space<vmem>>, vector<2x2x32xf32>
      tpu.vector_store %arg9[%c0_11, %c0_12, %c0_13], %19 {strides = array<i32>} : memref<2x2x32xf32, #tpu.memory_space<vmem>>, vector<2x2x32xf32>,
      %cst_14 = arith.constant 0.000000e+00 : f32
      %21 = vector.broadcast %cst_14 : f32 to vector<2x2x32xf32>
      %c0_15 = arith.constant 0 : index
      %c0_16 = arith.constant 0 : index
      %c0_17 = arith.constant 0 : index
      %22 = vector.load %arg10[%c0_15, %c0_16, %c0_17] : memref<2x2x32xf32, #tpu.memory_space<vmem>>, vector<2x2x32xf32>
      tpu.vector_store %arg10[%c0_15, %c0_16, %c0_17], %21 {strides = array<i32>} : memref<2x2x32xf32, #tpu.memory_space<vmem>>, vector<2x2x32xf32>,
    } else {
    }
    %c4_i32 = arith.constant 4 : i32
    %3 = arith.muli %arg0, %c4_i32 : i32
    %c1_i32 = arith.constant 1 : i32
    %4 = arith.subi %c1_i32, %arg0 : i32
    %c4_i32_1 = arith.constant 4 : i32
    %5 = arith.muli %4, %c4_i32_1 : i32
    %c0 = arith.constant 0 : index
    %6 = memref.load %arg1[%c0] : memref<2xi32, #tpu.memory_space<smem>>
    %c0_2 = arith.constant 0 : index
    %c0_3 = arith.constant 0 : index
    %7 = vector.load %arg2[%c0_2, %c0_3] : memref<2x1xi32, #tpu.memory_space<vmem>>, vector<2x1xi32>
    %c0_4 = arith.constant 0 : index
    %c0_5 = arith.constant 0 : index
    %c0_6 = arith.constant 0 : index
    %8 = vector.load %arg5[%c0_4, %c0_5, %c0_6] : memref<2x32x128xbf16, #tpu.memory_space<vmem>>, vector<2x32x128xbf16>
    %c0_7 = arith.constant 0 : index
    %c0_8 = arith.constant 0 : index
    %9 = vector.load %arg6[%c0_7, %c0_8] : memref<2x128xf32, #tpu.memory_space<vmem>>, vector<2x128xf32>
    %10 = vector.shape_cast %9 : vector<2x128xf32> to vector<2x1x128xf32>
    %11 = arith.cmpi slt, %3, %6 : i32
    %12 = arith.cmpi slt, %5, %6 : i32
    %13 = arith.ori %11, %12 : i1
    %14 = arith.extui %13 : i1 to i32
    %c0_i32_9 = arith.constant 0 : i32
    %15 = arith.cmpi ne, %14, %c0_i32_9 : i32
    scf.if %15 {
      %c0_i32_11 = arith.constant 0 : i32
      %c3_i32 = arith.constant 3 : i32
      %19 = arith.subi %c3_i32, %c0_i32_11 : i32
      %20 = arith.addi %3, %c0_i32_11 : i32
      %21 = arith.addi %5, %19 : i32
      %c0_12 = arith.constant 0 : index
      %c0_13 = arith.constant 0 : index
      %c0_14 = arith.constant 0 : index
      %22 = vector.load %arg9[%c0_12, %c0_13, %c0_14] : memref<2x2x32xf32, #tpu.memory_space<vmem>>, vector<2x2x32xf32>
      %23 = arith.truncf %22 : vector<2x2x32xf32> to vector<2x2x32xbf16>
      "tpu.trace_start"() <{level = 10 : i32, message = "kbh,khg->kbg"}> : () -> ()
      %cst = arith.constant dense<0.000000e+00> : vector<2x2x128xf32>
      %24 = tpu.matmul %23, %8, %cst {dimension_numbers = #tpu.dot_dimension_numbers<[2], [1], [1], [2], [0, 0, 0, 1, 1, 2], [0], [0]>} : vector<2x2x32xbf16>, vector<2x32x128xbf16>, vector<2x2x128xf32> -> vector<2x2x128xf32>
      "tpu.trace_stop"() : () -> ()
      %c0_15 = arith.constant 0 : index
      %25 = arith.index_cast %c0_i32_11 : i32 to index
      %c0_16 = arith.constant 0 : index
      %c0_17 = arith.constant 0 : index
      %26 = vector.load %arg3[%c0_15, %25, %c0_16, %c0_17] : memref<1x4x2x128xbf16, #tpu.memory_space<vmem>>, vector<1x1x2x128xbf16>
      %27 = vector.shape_cast %26 : vector<1x1x2x128xbf16> to vector<2x128xbf16>
      %c0_18 = arith.constant 0 : index
      %28 = arith.index_cast %19 : i32 to index
      %c0_19 = arith.constant 0 : index
      %c0_20 = arith.constant 0 : index
      %29 = vector.load %arg4[%c0_18, %28, %c0_19, %c0_20] : memref<1x4x2x128xbf16, #tpu.memory_space<vmem>>, vector<1x1x2x128xbf16>
      %30 = vector.shape_cast %29 : vector<1x1x2x128xbf16> to vector<2x128xbf16>
      %31 = vector.shape_cast %27 : vector<2x128xbf16> to vector<1x2x128xbf16>
      %32 = vector.shape_cast %30 : vector<2x128xbf16> to vector<1x2x128xbf16>
      %33 = tpu.concatenate %31, %32 in 0 : vector<1x2x128xbf16>, vector<1x2x128xbf16> -> vector<2x2x128xbf16>
      %34 = arith.extf %33 : vector<2x2x128xbf16> to vector<2x2x128xf32>
      %35 = arith.addf %34, %24 : vector<2x2x128xf32>
      %36 = vector.broadcast %10 : vector<2x1x128xf32> to vector<2x2x128xf32>
      %37 = arith.addf %35, %36 : vector<2x2x128xf32>
      %38 = vector.extract_strided_slice %37 {offsets = [0, 0, 0], sizes = [2, 2, 32], strides = [1, 1, 1]} : vector<2x2x128xf32> to vector<2x2x32xf32>
      %39 = arith.negf %38 : vector<2x2x32xf32>
      %40 = math.exp %39 : vector<2x2x32xf32>
      %cst_21 = arith.constant 1.000000e+00 : f32
      %41 = vector.broadcast %cst_21 : f32 to vector<2x2x32xf32>
      %42 = arith.addf %41, %40 : vector<2x2x32xf32>
      %43 = arith.divf %41, %42 : vector<2x2x32xf32>
      %44 = vector.extract_strided_slice %37 {offsets = [0, 0, 32], sizes = [2, 2, 32], strides = [1, 1, 1]} : vector<2x2x128xf32> to vector<2x2x32xf32>
      %45 = arith.negf %44 : vector<2x2x32xf32>
      %46 = math.exp %45 : vector<2x2x32xf32>
      %cst_22 = arith.constant 1.000000e+00 : f32
      %47 = vector.broadcast %cst_22 : f32 to vector<2x2x32xf32>
      %48 = arith.addf %47, %46 : vector<2x2x32xf32>
      %49 = arith.divf %47, %48 : vector<2x2x32xf32>
      %50 = vector.extract_strided_slice %37 {offsets = [0, 0, 64], sizes = [2, 2, 32], strides = [1, 1, 1]} : vector<2x2x128xf32> to vector<2x2x32xf32>
      %51 = math.tanh %50 : vector<2x2x32xf32>
      %52 = vector.extract_strided_slice %37 {offsets = [0, 0, 96], sizes = [2, 2, 32], strides = [1, 1, 1]} : vector<2x2x128xf32> to vector<2x2x32xf32>
      %53 = arith.negf %52 : vector<2x2x32xf32>
      %54 = math.exp %53 : vector<2x2x32xf32>
      %cst_23 = arith.constant 1.000000e+00 : f32
      %55 = vector.broadcast %cst_23 : f32 to vector<2x2x32xf32>
      %56 = arith.addf %55, %54 : vector<2x2x32xf32>
      %57 = arith.divf %55, %56 : vector<2x2x32xf32>
      %c0_24 = arith.constant 0 : index
      %c0_25 = arith.constant 0 : index
      %c0_26 = arith.constant 0 : index
      %58 = vector.load %arg10[%c0_24, %c0_25, %c0_26] : memref<2x2x32xf32, #tpu.memory_space<vmem>>, vector<2x2x32xf32>
      %59 = arith.mulf %49, %58 : vector<2x2x32xf32>
      %60 = arith.mulf %43, %51 : vector<2x2x32xf32>
      %61 = arith.addf %59, %60 : vector<2x2x32xf32>
      %62 = math.tanh %61 : vector<2x2x32xf32>
      %63 = arith.mulf %57, %62 : vector<2x2x32xf32>
      %64 = vector.broadcast %20 : i32 to vector<2x1xi32>
      %65 = arith.cmpi slt, %64, %7 : vector<2x1xi32>
      %66 = vector.broadcast %21 : i32 to vector<2x1xi32>
      %67 = arith.cmpi slt, %66, %7 : vector<2x1xi32>
      %68 = vector.shape_cast %65 : vector<2x1xi1> to vector<1x2x1xi1>
      %69 = vector.shape_cast %67 : vector<2x1xi1> to vector<1x2x1xi1>
      %70 = tpu.concatenate %68, %69 in 0 : vector<1x2x1xi1>, vector<1x2x1xi1> -> vector<2x2x1xi1>
      %c0_27 = arith.constant 0 : index
      %c0_28 = arith.constant 0 : index
      %c0_29 = arith.constant 0 : index
      %71 = vector.load %arg9[%c0_27, %c0_28, %c0_29] : memref<2x2x32xf32, #tpu.memory_space<vmem>>, vector<2x2x32xf32>
      %72 = vector.shape_cast %70 : vector<2x2x1xi1> to vector<2x2x1xi1>
      %73 = vector.broadcast %72 : vector<2x2x1xi1> to vector<2x2x32xi1>
      %74 = arith.select %73, %63, %71 : vector<2x2x32xi1>, vector<2x2x32xf32>
      %c0_30 = arith.constant 0 : index
      %c0_31 = arith.constant 0 : index
      %c0_32 = arith.constant 0 : index
      %75 = vector.load %arg9[%c0_30, %c0_31, %c0_32] : memref<2x2x32xf32, #tpu.memory_space<vmem>>, vector<2x2x32xf32>
      tpu.vector_store %arg9[%c0_30, %c0_31, %c0_32], %74 {strides = array<i32>} : memref<2x2x32xf32, #tpu.memory_space<vmem>>, vector<2x2x32xf32>,
      %c0_33 = arith.constant 0 : index
      %c0_34 = arith.constant 0 : index
      %c0_35 = arith.constant 0 : index
      %76 = vector.load %arg10[%c0_33, %c0_34, %c0_35] : memref<2x2x32xf32, #tpu.memory_space<vmem>>, vector<2x2x32xf32>
      %77 = vector.shape_cast %70 : vector<2x2x1xi1> to vector<2x2x1xi1>
      %78 = vector.broadcast %77 : vector<2x2x1xi1> to vector<2x2x32xi1>
      %79 = arith.select %78, %61, %76 : vector<2x2x32xi1>, vector<2x2x32xf32>
      %c0_36 = arith.constant 0 : index
      %c0_37 = arith.constant 0 : index
      %c0_38 = arith.constant 0 : index
      %80 = vector.load %arg10[%c0_36, %c0_37, %c0_38] : memref<2x2x32xf32, #tpu.memory_space<vmem>>, vector<2x2x32xf32>
      tpu.vector_store %arg10[%c0_36, %c0_37, %c0_38], %79 {strides = array<i32>} : memref<2x2x32xf32, #tpu.memory_space<vmem>>, vector<2x2x32xf32>,
      %cst_39 = arith.constant 0.000000e+00 : f32
      %81 = vector.shape_cast %70 : vector<2x2x1xi1> to vector<2x2x1xi1>
      %82 = vector.broadcast %81 : vector<2x2x1xi1> to vector<2x2x32xi1>
      %83 = vector.broadcast %cst_39 : f32 to vector<2x2x32xf32>
      %84 = arith.select %82, %63, %83 : vector<2x2x32xi1>, vector<2x2x32xf32>
      %85 = vector.extract_strided_slice %84 {offsets = [0, 0, 0], sizes = [1, 2, 32], strides = [1, 1, 1]} : vector<2x2x32xf32> to vector<1x2x32xf32>
      %86 = vector.shape_cast %85 : vector<1x2x32xf32> to vector<2x32xf32>
      %87 = arith.index_cast %c0_i32_11 : i32 to index
      %c0_40 = arith.constant 0 : index
      %c0_41 = arith.constant 0 : index
      %88 = vector.load %arg7[%87, %c0_40, %c0_41] : memref<4x2x32xf32, #tpu.memory_space<vmem>>, vector<1x2x32xf32>
      %89 = vector.shape_cast %88 : vector<1x2x32xf32> to vector<2x32xf32>
      %90 = vector.shape_cast %86 : vector<2x32xf32> to vector<1x2x32xf32>
      tpu.vector_store %arg7[%87, %c0_40, %c0_41], %90 {strides = array<i32>} : memref<4x2x32xf32, #tpu.memory_space<vmem>>, vector<1x2x32xf32>,
      %91 = vector.extract_strided_slice %84 {offsets = [1, 0, 0], sizes = [1, 2, 32], strides = [1, 1, 1]} : vector<2x2x32xf32> to vector<1x2x32xf32>
      %92 = vector.shape_cast %91 : vector<1x2x32xf32> to vector<2x32xf32>
      %93 = arith.index_cast %19 : i32 to index
      %c0_42 = arith.constant 0 : index
      %c0_43 = arith.constant 0 : index
      %94 = vector.load %arg8[%93, %c0_42, %c0_43] : memref<4x2x32xf32, #tpu.memory_space<vmem>>, vector<1x2x32xf32>
      %95 = vector.shape_cast %94 : vector<1x2x32xf32> to vector<2x32xf32>
      %96 = vector.shape_cast %92 : vector<2x32xf32> to vector<1x2x32xf32>
      tpu.vector_store %arg8[%93, %c0_42, %c0_43], %96 {strides = array<i32>} : memref<4x2x32xf32, #tpu.memory_space<vmem>>, vector<1x2x32xf32>,
      %c1_i32_44 = arith.constant 1 : i32
      %c3_i32_45 = arith.constant 3 : i32
      %97 = arith.subi %c3_i32_45, %c1_i32_44 : i32
      %98 = arith.addi %3, %c1_i32_44 : i32
      %99 = arith.addi %5, %97 : i32
      %c0_46 = arith.constant 0 : index
      %c0_47 = arith.constant 0 : index
      %c0_48 = arith.constant 0 : index
      %100 = vector.load %arg9[%c0_46, %c0_47, %c0_48] : memref<2x2x32xf32, #tpu.memory_space<vmem>>, vector<2x2x32xf32>
      %101 = arith.truncf %100 : vector<2x2x32xf32> to vector<2x2x32xbf16>
      "tpu.trace_start"() <{level = 10 : i32, message = "kbh,khg->kbg"}> : () -> ()
      %cst_49 = arith.constant dense<0.000000e+00> : vector<2x2x128xf32>
      %102 = tpu.matmul %101, %8, %cst_49 {dimension_numbers = #tpu.dot_dimension_numbers<[2], [1], [1], [2], [0, 0, 0, 1, 1, 2], [0], [0]>} : vector<2x2x32xbf16>, vector<2x32x128xbf16>, vector<2x2x128xf32> -> vector<2x2x128xf32>
      "tpu.trace_stop"() : () -> ()
      %c0_50 = arith.constant 0 : index
      %103 = arith.index_cast %c1_i32_44 : i32 to index
      %c0_51 = arith.constant 0 : index
      %c0_52 = arith.constant 0 : index
      %104 = vector.load %arg3[%c0_50, %103, %c0_51, %c0_52] : memref<1x4x2x128xbf16, #tpu.memory_space<vmem>>, vector<1x1x2x128xbf16>
      %105 = vector.shape_cast %104 : vector<1x1x2x128xbf16> to vector<2x128xbf16>
      %c0_53 = arith.constant 0 : index
      %106 = arith.index_cast %97 : i32 to index
      %c0_54 = arith.constant 0 : index
      %c0_55 = arith.constant 0 : index
      %107 = vector.load %arg4[%c0_53, %106, %c0_54, %c0_55] : memref<1x4x2x128xbf16, #tpu.memory_space<vmem>>, vector<1x1x2x128xbf16>
      %108 = vector.shape_cast %107 : vector<1x1x2x128xbf16> to vector<2x128xbf16>
      %109 = vector.shape_cast %105 : vector<2x128xbf16> to vector<1x2x128xbf16>
      %110 = vector.shape_cast %108 : vector<2x128xbf16> to vector<1x2x128xbf16>
      %111 = tpu.concatenate %109, %110 in 0 : vector<1x2x128xbf16>, vector<1x2x128xbf16> -> vector<2x2x128xbf16>
      %112 = arith.extf %111 : vector<2x2x128xbf16> to vector<2x2x128xf32>
      %113 = arith.addf %112, %102 : vector<2x2x128xf32>
      %114 = vector.broadcast %10 : vector<2x1x128xf32> to vector<2x2x128xf32>
      %115 = arith.addf %113, %114 : vector<2x2x128xf32>
      %116 = vector.extract_strided_slice %115 {offsets = [0, 0, 0], sizes = [2, 2, 32], strides = [1, 1, 1]} : vector<2x2x128xf32> to vector<2x2x32xf32>
      %117 = arith.negf %116 : vector<2x2x32xf32>
      %118 = math.exp %117 : vector<2x2x32xf32>
      %cst_56 = arith.constant 1.000000e+00 : f32
      %119 = vector.broadcast %cst_56 : f32 to vector<2x2x32xf32>
      %120 = arith.addf %119, %118 : vector<2x2x32xf32>
      %121 = arith.divf %119, %120 : vector<2x2x32xf32>
      %122 = vector.extract_strided_slice %115 {offsets = [0, 0, 32], sizes = [2, 2, 32], strides = [1, 1, 1]} : vector<2x2x128xf32> to vector<2x2x32xf32>
      %123 = arith.negf %122 : vector<2x2x32xf32>
      %124 = math.exp %123 : vector<2x2x32xf32>
      %cst_57 = arith.constant 1.000000e+00 : f32
      %125 = vector.broadcast %cst_57 : f32 to vector<2x2x32xf32>
      %126 = arith.addf %125, %124 : vector<2x2x32xf32>
      %127 = arith.divf %125, %126 : vector<2x2x32xf32>
      %128 = vector.extract_strided_slice %115 {offsets = [0, 0, 64], sizes = [2, 2, 32], strides = [1, 1, 1]} : vector<2x2x128xf32> to vector<2x2x32xf32>
      %129 = math.tanh %128 : vector<2x2x32xf32>
      %130 = vector.extract_strided_slice %115 {offsets = [0, 0, 96], sizes = [2, 2, 32], strides = [1, 1, 1]} : vector<2x2x128xf32> to vector<2x2x32xf32>
      %131 = arith.negf %130 : vector<2x2x32xf32>
      %132 = math.exp %131 : vector<2x2x32xf32>
      %cst_58 = arith.constant 1.000000e+00 : f32
      %133 = vector.broadcast %cst_58 : f32 to vector<2x2x32xf32>
      %134 = arith.addf %133, %132 : vector<2x2x32xf32>
      %135 = arith.divf %133, %134 : vector<2x2x32xf32>
      %c0_59 = arith.constant 0 : index
      %c0_60 = arith.constant 0 : index
      %c0_61 = arith.constant 0 : index
      %136 = vector.load %arg10[%c0_59, %c0_60, %c0_61] : memref<2x2x32xf32, #tpu.memory_space<vmem>>, vector<2x2x32xf32>
      %137 = arith.mulf %127, %136 : vector<2x2x32xf32>
      %138 = arith.mulf %121, %129 : vector<2x2x32xf32>
      %139 = arith.addf %137, %138 : vector<2x2x32xf32>
      %140 = math.tanh %139 : vector<2x2x32xf32>
      %141 = arith.mulf %135, %140 : vector<2x2x32xf32>
      %142 = vector.broadcast %98 : i32 to vector<2x1xi32>
      %143 = arith.cmpi slt, %142, %7 : vector<2x1xi32>
      %144 = vector.broadcast %99 : i32 to vector<2x1xi32>
      %145 = arith.cmpi slt, %144, %7 : vector<2x1xi32>
      %146 = vector.shape_cast %143 : vector<2x1xi1> to vector<1x2x1xi1>
      %147 = vector.shape_cast %145 : vector<2x1xi1> to vector<1x2x1xi1>
      %148 = tpu.concatenate %146, %147 in 0 : vector<1x2x1xi1>, vector<1x2x1xi1> -> vector<2x2x1xi1>
      %c0_62 = arith.constant 0 : index
      %c0_63 = arith.constant 0 : index
      %c0_64 = arith.constant 0 : index
      %149 = vector.load %arg9[%c0_62, %c0_63, %c0_64] : memref<2x2x32xf32, #tpu.memory_space<vmem>>, vector<2x2x32xf32>
      %150 = vector.shape_cast %148 : vector<2x2x1xi1> to vector<2x2x1xi1>
      %151 = vector.broadcast %150 : vector<2x2x1xi1> to vector<2x2x32xi1>
      %152 = arith.select %151, %141, %149 : vector<2x2x32xi1>, vector<2x2x32xf32>
      %c0_65 = arith.constant 0 : index
      %c0_66 = arith.constant 0 : index
      %c0_67 = arith.constant 0 : index
      %153 = vector.load %arg9[%c0_65, %c0_66, %c0_67] : memref<2x2x32xf32, #tpu.memory_space<vmem>>, vector<2x2x32xf32>
      tpu.vector_store %arg9[%c0_65, %c0_66, %c0_67], %152 {strides = array<i32>} : memref<2x2x32xf32, #tpu.memory_space<vmem>>, vector<2x2x32xf32>,
      %c0_68 = arith.constant 0 : index
      %c0_69 = arith.constant 0 : index
      %c0_70 = arith.constant 0 : index
      %154 = vector.load %arg10[%c0_68, %c0_69, %c0_70] : memref<2x2x32xf32, #tpu.memory_space<vmem>>, vector<2x2x32xf32>
      %155 = vector.shape_cast %148 : vector<2x2x1xi1> to vector<2x2x1xi1>
      %156 = vector.broadcast %155 : vector<2x2x1xi1> to vector<2x2x32xi1>
      %157 = arith.select %156, %139, %154 : vector<2x2x32xi1>, vector<2x2x32xf32>
      %c0_71 = arith.constant 0 : index
      %c0_72 = arith.constant 0 : index
      %c0_73 = arith.constant 0 : index
      %158 = vector.load %arg10[%c0_71, %c0_72, %c0_73] : memref<2x2x32xf32, #tpu.memory_space<vmem>>, vector<2x2x32xf32>
      tpu.vector_store %arg10[%c0_71, %c0_72, %c0_73], %157 {strides = array<i32>} : memref<2x2x32xf32, #tpu.memory_space<vmem>>, vector<2x2x32xf32>,
      %cst_74 = arith.constant 0.000000e+00 : f32
      %159 = vector.shape_cast %148 : vector<2x2x1xi1> to vector<2x2x1xi1>
      %160 = vector.broadcast %159 : vector<2x2x1xi1> to vector<2x2x32xi1>
      %161 = vector.broadcast %cst_74 : f32 to vector<2x2x32xf32>
      %162 = arith.select %160, %141, %161 : vector<2x2x32xi1>, vector<2x2x32xf32>
      %163 = vector.extract_strided_slice %162 {offsets = [0, 0, 0], sizes = [1, 2, 32], strides = [1, 1, 1]} : vector<2x2x32xf32> to vector<1x2x32xf32>
      %164 = vector.shape_cast %163 : vector<1x2x32xf32> to vector<2x32xf32>
      %165 = arith.index_cast %c1_i32_44 : i32 to index
      %c0_75 = arith.constant 0 : index
      %c0_76 = arith.constant 0 : index
      %166 = vector.load %arg7[%165, %c0_75, %c0_76] : memref<4x2x32xf32, #tpu.memory_space<vmem>>, vector<1x2x32xf32>
      %167 = vector.shape_cast %166 : vector<1x2x32xf32> to vector<2x32xf32>
      %168 = vector.shape_cast %164 : vector<2x32xf32> to vector<1x2x32xf32>
      tpu.vector_store %arg7[%165, %c0_75, %c0_76], %168 {strides = array<i32>} : memref<4x2x32xf32, #tpu.memory_space<vmem>>, vector<1x2x32xf32>,
      %169 = vector.extract_strided_slice %162 {offsets = [1, 0, 0], sizes = [1, 2, 32], strides = [1, 1, 1]} : vector<2x2x32xf32> to vector<1x2x32xf32>
      %170 = vector.shape_cast %169 : vector<1x2x32xf32> to vector<2x32xf32>
      %171 = arith.index_cast %97 : i32 to index
      %c0_77 = arith.constant 0 : index
      %c0_78 = arith.constant 0 : index
      %172 = vector.load %arg8[%171, %c0_77, %c0_78] : memref<4x2x32xf32, #tpu.memory_space<vmem>>, vector<1x2x32xf32>
      %173 = vector.shape_cast %172 : vector<1x2x32xf32> to vector<2x32xf32>
      %174 = vector.shape_cast %170 : vector<2x32xf32> to vector<1x2x32xf32>
      tpu.vector_store %arg8[%171, %c0_77, %c0_78], %174 {strides = array<i32>} : memref<4x2x32xf32, #tpu.memory_space<vmem>>, vector<1x2x32xf32>,
      %c2_i32 = arith.constant 2 : i32
      %c3_i32_79 = arith.constant 3 : i32
      %175 = arith.subi %c3_i32_79, %c2_i32 : i32
      %176 = arith.addi %3, %c2_i32 : i32
      %177 = arith.addi %5, %175 : i32
      %c0_80 = arith.constant 0 : index
      %c0_81 = arith.constant 0 : index
      %c0_82 = arith.constant 0 : index
      %178 = vector.load %arg9[%c0_80, %c0_81, %c0_82] : memref<2x2x32xf32, #tpu.memory_space<vmem>>, vector<2x2x32xf32>
      %179 = arith.truncf %178 : vector<2x2x32xf32> to vector<2x2x32xbf16>
      "tpu.trace_start"() <{level = 10 : i32, message = "kbh,khg->kbg"}> : () -> ()
      %cst_83 = arith.constant dense<0.000000e+00> : vector<2x2x128xf32>
      %180 = tpu.matmul %179, %8, %cst_83 {dimension_numbers = #tpu.dot_dimension_numbers<[2], [1], [1], [2], [0, 0, 0, 1, 1, 2], [0], [0]>} : vector<2x2x32xbf16>, vector<2x32x128xbf16>, vector<2x2x128xf32> -> vector<2x2x128xf32>
      "tpu.trace_stop"() : () -> ()
      %c0_84 = arith.constant 0 : index
      %181 = arith.index_cast %c2_i32 : i32 to index
      %c0_85 = arith.constant 0 : index
      %c0_86 = arith.constant 0 : index
      %182 = vector.load %arg3[%c0_84, %181, %c0_85, %c0_86] : memref<1x4x2x128xbf16, #tpu.memory_space<vmem>>, vector<1x1x2x128xbf16>
      %183 = vector.shape_cast %182 : vector<1x1x2x128xbf16> to vector<2x128xbf16>
      %c0_87 = arith.constant 0 : index
      %184 = arith.index_cast %175 : i32 to index
      %c0_88 = arith.constant 0 : index
      %c0_89 = arith.constant 0 : index
      %185 = vector.load %arg4[%c0_87, %184, %c0_88, %c0_89] : memref<1x4x2x128xbf16, #tpu.memory_space<vmem>>, vector<1x1x2x128xbf16>
      %186 = vector.shape_cast %185 : vector<1x1x2x128xbf16> to vector<2x128xbf16>
      %187 = vector.shape_cast %183 : vector<2x128xbf16> to vector<1x2x128xbf16>
      %188 = vector.shape_cast %186 : vector<2x128xbf16> to vector<1x2x128xbf16>
      %189 = tpu.concatenate %187, %188 in 0 : vector<1x2x128xbf16>, vector<1x2x128xbf16> -> vector<2x2x128xbf16>
      %190 = arith.extf %189 : vector<2x2x128xbf16> to vector<2x2x128xf32>
      %191 = arith.addf %190, %180 : vector<2x2x128xf32>
      %192 = vector.broadcast %10 : vector<2x1x128xf32> to vector<2x2x128xf32>
      %193 = arith.addf %191, %192 : vector<2x2x128xf32>
      %194 = vector.extract_strided_slice %193 {offsets = [0, 0, 0], sizes = [2, 2, 32], strides = [1, 1, 1]} : vector<2x2x128xf32> to vector<2x2x32xf32>
      %195 = arith.negf %194 : vector<2x2x32xf32>
      %196 = math.exp %195 : vector<2x2x32xf32>
      %cst_90 = arith.constant 1.000000e+00 : f32
      %197 = vector.broadcast %cst_90 : f32 to vector<2x2x32xf32>
      %198 = arith.addf %197, %196 : vector<2x2x32xf32>
      %199 = arith.divf %197, %198 : vector<2x2x32xf32>
      %200 = vector.extract_strided_slice %193 {offsets = [0, 0, 32], sizes = [2, 2, 32], strides = [1, 1, 1]} : vector<2x2x128xf32> to vector<2x2x32xf32>
      %201 = arith.negf %200 : vector<2x2x32xf32>
      %202 = math.exp %201 : vector<2x2x32xf32>
      %cst_91 = arith.constant 1.000000e+00 : f32
      %203 = vector.broadcast %cst_91 : f32 to vector<2x2x32xf32>
      %204 = arith.addf %203, %202 : vector<2x2x32xf32>
      %205 = arith.divf %203, %204 : vector<2x2x32xf32>
      %206 = vector.extract_strided_slice %193 {offsets = [0, 0, 64], sizes = [2, 2, 32], strides = [1, 1, 1]} : vector<2x2x128xf32> to vector<2x2x32xf32>
      %207 = math.tanh %206 : vector<2x2x32xf32>
      %208 = vector.extract_strided_slice %193 {offsets = [0, 0, 96], sizes = [2, 2, 32], strides = [1, 1, 1]} : vector<2x2x128xf32> to vector<2x2x32xf32>
      %209 = arith.negf %208 : vector<2x2x32xf32>
      %210 = math.exp %209 : vector<2x2x32xf32>
      %cst_92 = arith.constant 1.000000e+00 : f32
      %211 = vector.broadcast %cst_92 : f32 to vector<2x2x32xf32>
      %212 = arith.addf %211, %210 : vector<2x2x32xf32>
      %213 = arith.divf %211, %212 : vector<2x2x32xf32>
      %c0_93 = arith.constant 0 : index
      %c0_94 = arith.constant 0 : index
      %c0_95 = arith.constant 0 : index
      %214 = vector.load %arg10[%c0_93, %c0_94, %c0_95] : memref<2x2x32xf32, #tpu.memory_space<vmem>>, vector<2x2x32xf32>
      %215 = arith.mulf %205, %214 : vector<2x2x32xf32>
      %216 = arith.mulf %199, %207 : vector<2x2x32xf32>
      %217 = arith.addf %215, %216 : vector<2x2x32xf32>
      %218 = math.tanh %217 : vector<2x2x32xf32>
      %219 = arith.mulf %213, %218 : vector<2x2x32xf32>
      %220 = vector.broadcast %176 : i32 to vector<2x1xi32>
      %221 = arith.cmpi slt, %220, %7 : vector<2x1xi32>
      %222 = vector.broadcast %177 : i32 to vector<2x1xi32>
      %223 = arith.cmpi slt, %222, %7 : vector<2x1xi32>
      %224 = vector.shape_cast %221 : vector<2x1xi1> to vector<1x2x1xi1>
      %225 = vector.shape_cast %223 : vector<2x1xi1> to vector<1x2x1xi1>
      %226 = tpu.concatenate %224, %225 in 0 : vector<1x2x1xi1>, vector<1x2x1xi1> -> vector<2x2x1xi1>
      %c0_96 = arith.constant 0 : index
      %c0_97 = arith.constant 0 : index
      %c0_98 = arith.constant 0 : index
      %227 = vector.load %arg9[%c0_96, %c0_97, %c0_98] : memref<2x2x32xf32, #tpu.memory_space<vmem>>, vector<2x2x32xf32>
      %228 = vector.shape_cast %226 : vector<2x2x1xi1> to vector<2x2x1xi1>
      %229 = vector.broadcast %228 : vector<2x2x1xi1> to vector<2x2x32xi1>
      %230 = arith.select %229, %219, %227 : vector<2x2x32xi1>, vector<2x2x32xf32>
      %c0_99 = arith.constant 0 : index
      %c0_100 = arith.constant 0 : index
      %c0_101 = arith.constant 0 : index
      %231 = vector.load %arg9[%c0_99, %c0_100, %c0_101] : memref<2x2x32xf32, #tpu.memory_space<vmem>>, vector<2x2x32xf32>
      tpu.vector_store %arg9[%c0_99, %c0_100, %c0_101], %230 {strides = array<i32>} : memref<2x2x32xf32, #tpu.memory_space<vmem>>, vector<2x2x32xf32>,
      %c0_102 = arith.constant 0 : index
      %c0_103 = arith.constant 0 : index
      %c0_104 = arith.constant 0 : index
      %232 = vector.load %arg10[%c0_102, %c0_103, %c0_104] : memref<2x2x32xf32, #tpu.memory_space<vmem>>, vector<2x2x32xf32>
      %233 = vector.shape_cast %226 : vector<2x2x1xi1> to vector<2x2x1xi1>
      %234 = vector.broadcast %233 : vector<2x2x1xi1> to vector<2x2x32xi1>
      %235 = arith.select %234, %217, %232 : vector<2x2x32xi1>, vector<2x2x32xf32>
      %c0_105 = arith.constant 0 : index
      %c0_106 = arith.constant 0 : index
      %c0_107 = arith.constant 0 : index
      %236 = vector.load %arg10[%c0_105, %c0_106, %c0_107] : memref<2x2x32xf32, #tpu.memory_space<vmem>>, vector<2x2x32xf32>
      tpu.vector_store %arg10[%c0_105, %c0_106, %c0_107], %235 {strides = array<i32>} : memref<2x2x32xf32, #tpu.memory_space<vmem>>, vector<2x2x32xf32>,
      %cst_108 = arith.constant 0.000000e+00 : f32
      %237 = vector.shape_cast %226 : vector<2x2x1xi1> to vector<2x2x1xi1>
      %238 = vector.broadcast %237 : vector<2x2x1xi1> to vector<2x2x32xi1>
      %239 = vector.broadcast %cst_108 : f32 to vector<2x2x32xf32>
      %240 = arith.select %238, %219, %239 : vector<2x2x32xi1>, vector<2x2x32xf32>
      %241 = vector.extract_strided_slice %240 {offsets = [0, 0, 0], sizes = [1, 2, 32], strides = [1, 1, 1]} : vector<2x2x32xf32> to vector<1x2x32xf32>
      %242 = vector.shape_cast %241 : vector<1x2x32xf32> to vector<2x32xf32>
      %243 = arith.index_cast %c2_i32 : i32 to index
      %c0_109 = arith.constant 0 : index
      %c0_110 = arith.constant 0 : index
      %244 = vector.load %arg7[%243, %c0_109, %c0_110] : memref<4x2x32xf32, #tpu.memory_space<vmem>>, vector<1x2x32xf32>
      %245 = vector.shape_cast %244 : vector<1x2x32xf32> to vector<2x32xf32>
      %246 = vector.shape_cast %242 : vector<2x32xf32> to vector<1x2x32xf32>
      tpu.vector_store %arg7[%243, %c0_109, %c0_110], %246 {strides = array<i32>} : memref<4x2x32xf32, #tpu.memory_space<vmem>>, vector<1x2x32xf32>,
      %247 = vector.extract_strided_slice %240 {offsets = [1, 0, 0], sizes = [1, 2, 32], strides = [1, 1, 1]} : vector<2x2x32xf32> to vector<1x2x32xf32>
      %248 = vector.shape_cast %247 : vector<1x2x32xf32> to vector<2x32xf32>
      %249 = arith.index_cast %175 : i32 to index
      %c0_111 = arith.constant 0 : index
      %c0_112 = arith.constant 0 : index
      %250 = vector.load %arg8[%249, %c0_111, %c0_112] : memref<4x2x32xf32, #tpu.memory_space<vmem>>, vector<1x2x32xf32>
      %251 = vector.shape_cast %250 : vector<1x2x32xf32> to vector<2x32xf32>
      %252 = vector.shape_cast %248 : vector<2x32xf32> to vector<1x2x32xf32>
      tpu.vector_store %arg8[%249, %c0_111, %c0_112], %252 {strides = array<i32>} : memref<4x2x32xf32, #tpu.memory_space<vmem>>, vector<1x2x32xf32>,
      %c3_i32_113 = arith.constant 3 : i32
      %c3_i32_114 = arith.constant 3 : i32
      %253 = arith.subi %c3_i32_114, %c3_i32_113 : i32
      %254 = arith.addi %3, %c3_i32_113 : i32
      %255 = arith.addi %5, %253 : i32
      %c0_115 = arith.constant 0 : index
      %c0_116 = arith.constant 0 : index
      %c0_117 = arith.constant 0 : index
      %256 = vector.load %arg9[%c0_115, %c0_116, %c0_117] : memref<2x2x32xf32, #tpu.memory_space<vmem>>, vector<2x2x32xf32>
      %257 = arith.truncf %256 : vector<2x2x32xf32> to vector<2x2x32xbf16>
      "tpu.trace_start"() <{level = 10 : i32, message = "kbh,khg->kbg"}> : () -> ()
      %cst_118 = arith.constant dense<0.000000e+00> : vector<2x2x128xf32>
      %258 = tpu.matmul %257, %8, %cst_118 {dimension_numbers = #tpu.dot_dimension_numbers<[2], [1], [1], [2], [0, 0, 0, 1, 1, 2], [0], [0]>} : vector<2x2x32xbf16>, vector<2x32x128xbf16>, vector<2x2x128xf32> -> vector<2x2x128xf32>
      "tpu.trace_stop"() : () -> ()
      %c0_119 = arith.constant 0 : index
      %259 = arith.index_cast %c3_i32_113 : i32 to index
      %c0_120 = arith.constant 0 : index
      %c0_121 = arith.constant 0 : index
      %260 = vector.load %arg3[%c0_119, %259, %c0_120, %c0_121] : memref<1x4x2x128xbf16, #tpu.memory_space<vmem>>, vector<1x1x2x128xbf16>
      %261 = vector.shape_cast %260 : vector<1x1x2x128xbf16> to vector<2x128xbf16>
      %c0_122 = arith.constant 0 : index
      %262 = arith.index_cast %253 : i32 to index
      %c0_123 = arith.constant 0 : index
      %c0_124 = arith.constant 0 : index
      %263 = vector.load %arg4[%c0_122, %262, %c0_123, %c0_124] : memref<1x4x2x128xbf16, #tpu.memory_space<vmem>>, vector<1x1x2x128xbf16>
      %264 = vector.shape_cast %263 : vector<1x1x2x128xbf16> to vector<2x128xbf16>
      %265 = vector.shape_cast %261 : vector<2x128xbf16> to vector<1x2x128xbf16>
      %266 = vector.shape_cast %264 : vector<2x128xbf16> to vector<1x2x128xbf16>
      %267 = tpu.concatenate %265, %266 in 0 : vector<1x2x128xbf16>, vector<1x2x128xbf16> -> vector<2x2x128xbf16>
      %268 = arith.extf %267 : vector<2x2x128xbf16> to vector<2x2x128xf32>
      %269 = arith.addf %268, %258 : vector<2x2x128xf32>
      %270 = vector.broadcast %10 : vector<2x1x128xf32> to vector<2x2x128xf32>
      %271 = arith.addf %269, %270 : vector<2x2x128xf32>
      %272 = vector.extract_strided_slice %271 {offsets = [0, 0, 0], sizes = [2, 2, 32], strides = [1, 1, 1]} : vector<2x2x128xf32> to vector<2x2x32xf32>
      %273 = arith.negf %272 : vector<2x2x32xf32>
      %274 = math.exp %273 : vector<2x2x32xf32>
      %cst_125 = arith.constant 1.000000e+00 : f32
      %275 = vector.broadcast %cst_125 : f32 to vector<2x2x32xf32>
      %276 = arith.addf %275, %274 : vector<2x2x32xf32>
      %277 = arith.divf %275, %276 : vector<2x2x32xf32>
      %278 = vector.extract_strided_slice %271 {offsets = [0, 0, 32], sizes = [2, 2, 32], strides = [1, 1, 1]} : vector<2x2x128xf32> to vector<2x2x32xf32>
      %279 = arith.negf %278 : vector<2x2x32xf32>
      %280 = math.exp %279 : vector<2x2x32xf32>
      %cst_126 = arith.constant 1.000000e+00 : f32
      %281 = vector.broadcast %cst_126 : f32 to vector<2x2x32xf32>
      %282 = arith.addf %281, %280 : vector<2x2x32xf32>
      %283 = arith.divf %281, %282 : vector<2x2x32xf32>
      %284 = vector.extract_strided_slice %271 {offsets = [0, 0, 64], sizes = [2, 2, 32], strides = [1, 1, 1]} : vector<2x2x128xf32> to vector<2x2x32xf32>
      %285 = math.tanh %284 : vector<2x2x32xf32>
      %286 = vector.extract_strided_slice %271 {offsets = [0, 0, 96], sizes = [2, 2, 32], strides = [1, 1, 1]} : vector<2x2x128xf32> to vector<2x2x32xf32>
      %287 = arith.negf %286 : vector<2x2x32xf32>
      %288 = math.exp %287 : vector<2x2x32xf32>
      %cst_127 = arith.constant 1.000000e+00 : f32
      %289 = vector.broadcast %cst_127 : f32 to vector<2x2x32xf32>
      %290 = arith.addf %289, %288 : vector<2x2x32xf32>
      %291 = arith.divf %289, %290 : vector<2x2x32xf32>
      %c0_128 = arith.constant 0 : index
      %c0_129 = arith.constant 0 : index
      %c0_130 = arith.constant 0 : index
      %292 = vector.load %arg10[%c0_128, %c0_129, %c0_130] : memref<2x2x32xf32, #tpu.memory_space<vmem>>, vector<2x2x32xf32>
      %293 = arith.mulf %283, %292 : vector<2x2x32xf32>
      %294 = arith.mulf %277, %285 : vector<2x2x32xf32>
      %295 = arith.addf %293, %294 : vector<2x2x32xf32>
      %296 = math.tanh %295 : vector<2x2x32xf32>
      %297 = arith.mulf %291, %296 : vector<2x2x32xf32>
      %298 = vector.broadcast %254 : i32 to vector<2x1xi32>
      %299 = arith.cmpi slt, %298, %7 : vector<2x1xi32>
      %300 = vector.broadcast %255 : i32 to vector<2x1xi32>
      %301 = arith.cmpi slt, %300, %7 : vector<2x1xi32>
      %302 = vector.shape_cast %299 : vector<2x1xi1> to vector<1x2x1xi1>
      %303 = vector.shape_cast %301 : vector<2x1xi1> to vector<1x2x1xi1>
      %304 = tpu.concatenate %302, %303 in 0 : vector<1x2x1xi1>, vector<1x2x1xi1> -> vector<2x2x1xi1>
      %c0_131 = arith.constant 0 : index
      %c0_132 = arith.constant 0 : index
      %c0_133 = arith.constant 0 : index
      %305 = vector.load %arg9[%c0_131, %c0_132, %c0_133] : memref<2x2x32xf32, #tpu.memory_space<vmem>>, vector<2x2x32xf32>
      %306 = vector.shape_cast %304 : vector<2x2x1xi1> to vector<2x2x1xi1>
      %307 = vector.broadcast %306 : vector<2x2x1xi1> to vector<2x2x32xi1>
      %308 = arith.select %307, %297, %305 : vector<2x2x32xi1>, vector<2x2x32xf32>
      %c0_134 = arith.constant 0 : index
      %c0_135 = arith.constant 0 : index
      %c0_136 = arith.constant 0 : index
      %309 = vector.load %arg9[%c0_134, %c0_135, %c0_136] : memref<2x2x32xf32, #tpu.memory_space<vmem>>, vector<2x2x32xf32>
      tpu.vector_store %arg9[%c0_134, %c0_135, %c0_136], %308 {strides = array<i32>} : memref<2x2x32xf32, #tpu.memory_space<vmem>>, vector<2x2x32xf32>,
      %c0_137 = arith.constant 0 : index
      %c0_138 = arith.constant 0 : index
      %c0_139 = arith.constant 0 : index
      %310 = vector.load %arg10[%c0_137, %c0_138, %c0_139] : memref<2x2x32xf32, #tpu.memory_space<vmem>>, vector<2x2x32xf32>
      %311 = vector.shape_cast %304 : vector<2x2x1xi1> to vector<2x2x1xi1>
      %312 = vector.broadcast %311 : vector<2x2x1xi1> to vector<2x2x32xi1>
      %313 = arith.select %312, %295, %310 : vector<2x2x32xi1>, vector<2x2x32xf32>
      %c0_140 = arith.constant 0 : index
      %c0_141 = arith.constant 0 : index
      %c0_142 = arith.constant 0 : index
      %314 = vector.load %arg10[%c0_140, %c0_141, %c0_142] : memref<2x2x32xf32, #tpu.memory_space<vmem>>, vector<2x2x32xf32>
      tpu.vector_store %arg10[%c0_140, %c0_141, %c0_142], %313 {strides = array<i32>} : memref<2x2x32xf32, #tpu.memory_space<vmem>>, vector<2x2x32xf32>,
      %cst_143 = arith.constant 0.000000e+00 : f32
      %315 = vector.shape_cast %304 : vector<2x2x1xi1> to vector<2x2x1xi1>
      %316 = vector.broadcast %315 : vector<2x2x1xi1> to vector<2x2x32xi1>
      %317 = vector.broadcast %cst_143 : f32 to vector<2x2x32xf32>
      %318 = arith.select %316, %297, %317 : vector<2x2x32xi1>, vector<2x2x32xf32>
      %319 = vector.extract_strided_slice %318 {offsets = [0, 0, 0], sizes = [1, 2, 32], strides = [1, 1, 1]} : vector<2x2x32xf32> to vector<1x2x32xf32>
      %320 = vector.shape_cast %319 : vector<1x2x32xf32> to vector<2x32xf32>
      %321 = arith.index_cast %c3_i32_113 : i32 to index
      %c0_144 = arith.constant 0 : index
      %c0_145 = arith.constant 0 : index
      %322 = vector.load %arg7[%321, %c0_144, %c0_145] : memref<4x2x32xf32, #tpu.memory_space<vmem>>, vector<1x2x32xf32>
      %323 = vector.shape_cast %322 : vector<1x2x32xf32> to vector<2x32xf32>
      %324 = vector.shape_cast %320 : vector<2x32xf32> to vector<1x2x32xf32>
      tpu.vector_store %arg7[%321, %c0_144, %c0_145], %324 {strides = array<i32>} : memref<4x2x32xf32, #tpu.memory_space<vmem>>, vector<1x2x32xf32>,
      %325 = vector.extract_strided_slice %318 {offsets = [1, 0, 0], sizes = [1, 2, 32], strides = [1, 1, 1]} : vector<2x2x32xf32> to vector<1x2x32xf32>
      %326 = vector.shape_cast %325 : vector<1x2x32xf32> to vector<2x32xf32>
      %327 = arith.index_cast %253 : i32 to index
      %c0_146 = arith.constant 0 : index
      %c0_147 = arith.constant 0 : index
      %328 = vector.load %arg8[%327, %c0_146, %c0_147] : memref<4x2x32xf32, #tpu.memory_space<vmem>>, vector<1x2x32xf32>
      %329 = vector.shape_cast %328 : vector<1x2x32xf32> to vector<2x32xf32>
      %330 = vector.shape_cast %326 : vector<2x32xf32> to vector<1x2x32xf32>
      tpu.vector_store %arg8[%327, %c0_146, %c0_147], %330 {strides = array<i32>} : memref<4x2x32xf32, #tpu.memory_space<vmem>>, vector<1x2x32xf32>,
      %c4_i32_148 = arith.constant 4 : i32
    } else {
    }
    %true = arith.constant true
    %16 = arith.xori %13, %true : i1
    %17 = arith.extui %16 : i1 to i32
    %c0_i32_10 = arith.constant 0 : i32
    %18 = arith.cmpi ne, %17, %c0_i32_10 : i32
    scf.if %18 {
      %cst = arith.constant 0.000000e+00 : f32
      %19 = vector.broadcast %cst : f32 to vector<4x2x32xf32>
      %c0_11 = arith.constant 0 : index
      %c0_12 = arith.constant 0 : index
      %c0_13 = arith.constant 0 : index
      %20 = vector.load %arg7[%c0_11, %c0_12, %c0_13] : memref<4x2x32xf32, #tpu.memory_space<vmem>>, vector<4x2x32xf32>
      tpu.vector_store %arg7[%c0_11, %c0_12, %c0_13], %19 {strides = array<i32>} : memref<4x2x32xf32, #tpu.memory_space<vmem>>, vector<4x2x32xf32>,
      %cst_14 = arith.constant 0.000000e+00 : f32
      %21 = vector.broadcast %cst_14 : f32 to vector<4x2x32xf32>
      %c0_15 = arith.constant 0 : index
      %c0_16 = arith.constant 0 : index
      %c0_17 = arith.constant 0 : index
      %22 = vector.load %arg8[%c0_15, %c0_16, %c0_17] : memref<4x2x32xf32, #tpu.memory_space<vmem>>, vector<4x2x32xf32>
      tpu.vector_store %arg8[%c0_15, %c0_16, %c0_17], %21 {strides = array<i32>} : memref<4x2x32xf32, #tpu.memory_space<vmem>>, vector<4x2x32xf32>,
    } else {
    }
    return
  }
  func.func @transform_0(%arg0: i32, %arg1: memref<2xi32, #tpu.memory_space<smem>>) -> (i32, i32) {
    %c0_i32 = arith.constant 0 : i32
    %c0_i32_0 = arith.constant 0 : i32
    %c0_i32_1 = arith.constant 0 : i32
    return %c0_i32, %c0_i32_0 : i32, i32
  }
  func.func @transform_1(%arg0: i32, %arg1: memref<2xi32, #tpu.memory_space<smem>>) -> (i32, i32, i32, i32) {
    %c0_i32 = arith.constant 0 : i32
    %c0_i32_0 = arith.constant 0 : i32
    %c0_i32_1 = arith.constant 0 : i32
    %c0_i32_2 = arith.constant 0 : i32
    return %c0_i32, %arg0, %c0_i32_0, %c0_i32_1 : i32, i32, i32, i32
  }
  func.func @transform_2(%arg0: i32, %arg1: memref<2xi32, #tpu.memory_space<smem>>) -> (i32, i32, i32, i32) {
    %c1_i32 = arith.constant 1 : i32
    %0 = arith.subi %c1_i32, %arg0 : i32
    %c1_i32_0 = arith.constant 1 : i32
    %c0_i32 = arith.constant 0 : i32
    %c0_i32_1 = arith.constant 0 : i32
    %c0_i32_2 = arith.constant 0 : i32
    return %c1_i32_0, %0, %c0_i32, %c0_i32_1 : i32, i32, i32, i32
  }
  func.func @transform_3(%arg0: i32, %arg1: memref<2xi32, #tpu.memory_space<smem>>) -> (i32, i32, i32) {
    %c0_i32 = arith.constant 0 : i32
    %c0_i32_0 = arith.constant 0 : i32
    %c0_i32_1 = arith.constant 0 : i32
    %c0_i32_2 = arith.constant 0 : i32
    return %c0_i32, %c0_i32_0, %c0_i32_1 : i32, i32, i32
  }
  func.func @transform_4(%arg0: i32, %arg1: memref<2xi32, #tpu.memory_space<smem>>) -> (i32, i32) {
    %c0_i32 = arith.constant 0 : i32
    %c0_i32_0 = arith.constant 0 : i32
    %c0_i32_1 = arith.constant 0 : i32
    return %c0_i32, %c0_i32_0 : i32, i32
  }
  func.func @transform_5(%arg0: i32, %arg1: memref<2xi32, #tpu.memory_space<smem>>) -> (i32, i32, i32) {
    %c0_i32 = arith.constant 0 : i32
    %c0_i32_0 = arith.constant 0 : i32
    %c0_i32_1 = arith.constant 0 : i32
    return %arg0, %c0_i32, %c0_i32_0 : i32, i32, i32
  }
  func.func @transform_6(%arg0: i32, %arg1: memref<2xi32, #tpu.memory_space<smem>>) -> (i32, i32, i32) {
    %c1_i32 = arith.constant 1 : i32
    %0 = arith.subi %c1_i32, %arg0 : i32
    %c0_i32 = arith.constant 0 : i32
    %c0_i32_0 = arith.constant 0 : i32
    %c0_i32_1 = arith.constant 0 : i32
    return %0, %c0_i32, %c0_i32_0 : i32, i32, i32
  }
}

</mosaic_0001>

<bundles_post_ra>
// kernel: tpu_custom_call.1
= control target key start
LH: loop header
LB: loop body
LE: loop exit
PB: predicated region body
PF: predicated region fallthrough
CT: control target
= control target key end

     0   :  { %s2842_s0 = inlined_call_operand.vmem [shape: s32[2], index: 0, kind: input, shape index: {}]   ;;  %s2843_s1 = inlined_call_operand.vmem [shape: s32[2,1], index: 1, kind: input, shape index: {}]   ;;  %s2844_s2 = inlined_call_operand.hbm [shape: bf16[2,8,2,128], index: 2, kind: input, shape index: {}]   ;;  %s2845_s3 = inlined_call_operand.hbm [shape: bf16[2,8,2,128], index: 3, kind: input, shape index: {}]   ;;  %s2846_s4 = inlined_call_operand.hbm [shape: bf16[2,32,128], index: 4, kind: input, shape index: {}]   ;;  %s2847_s5 = inlined_call_operand.vmem [shape: f32[2,128], index: 5, kind: input, shape index: {}]   ;;  %s2848_s6 = inlined_call_operand.hbm [shape: f32[8,2,32], index: 6, kind: output, shape index: {0}]   ;;  %s2849_s7 = inlined_call_operand.hbm [shape: f32[8,2,32], index: 7, kind: output, shape index: {1}]  }
   0x1   :  { %2865 = sst [smem:[#allocation26_spill]] %s2844_s2  ;;  %s13_s26 = sshll.u32 %s2842_s0, 4  ;;  %s14_s26 = int_to_ptr.vmem [resolvable:$true] %s13_s26 }
   0x2   :  { %2866 = sst [smem:[#allocation27_spill]] %s2846_s4  ;;  %s1958_s27 = scalar_lea.vmem %s14_s26, 16 }
   0x3   :  { %p1959_p0 = scmp.ne.s32.totalorder %s14_s26, %s1958_s27  ;;  %p1963_p1 = scmp.lt.s32.totalorder %s14_s26, %s14_s26 }
   0x4   :  { %p1964_p2 = scmp.lt.s32.totalorder %s1958_s27, %s1958_s27 }
   0x6   :  { %p1965_p3 = por %p1964_p2, %p1963_p1 }
   0x8   :  { %p1966_p4 = pnand %p1965_p3, %p1959_p0 }
   0xa   :  { %1969 = shalt.err (!%p1966_p4)  }
   0xb   :  { %s2183_s28 = smov [#allocation5]  }
   0xc   :  { %16 = dma.vmem_to_smem %s14_s26, 16, %s2183_s28, [#allocation4] }
   0xd   :  { %2133 = dma.done.wait [#allocation4], 16 }
   0xe   :  { %2134 = vsyncadd [#allocation4], 4294967280 }
   0xf   :  { %18 = sfence }
  0x10   :  { %19 = vsyncpa [#allocation7], 0 }
  0x11   :  { %21 = vsyncpa [#allocation7 + $0x1], 0 }
  0x12   :  { %22 = vsyncpa [#allocation10], 0 }
  0x13   :  { %24 = vsyncpa [#allocation10 + $0x1], 0 }
  0x14   :  { %25 = vsyncpa [#allocation8], 0 }
  0x15   :  { %27 = vsyncpa [#allocation8 + $0x1], 0 }
  0x16   :  { %28 = vsyncpa [#allocation14], 0 }
  0x17   :  { %30 = vsyncpa [#allocation14 + $0x1], 0  ;;  %s2248_s0 = smov 0   ;;  %s2250_s29 = smov 0  }
  0x18   :  { %s2252_s30 = smov 0   ;;  %s2254_s8 = smov 0  }
  0x19   :  { %s2256_s9 = smov 0   ;;  %s2258_s10 = smov 0  }
  0x1a   :  { %s2260_s11 = smov 0  }
  0x1b LB: > { %2867 = sst [smem:[#allocation21_spill]] %s2157_s0  ;;  %s2284_s12 = sadd.s32 4294967295, %s2181_s11   ;;  %s2181_s11 = sphi %s2260_s11, %s2906_s11   ;;  %s2177_s10 = sphi %s2258_s10, %s2908_s10   ;;  %s2173_s9 = sphi %s2256_s9, %s2913_s9   ;;  %s2169_s8 = sphi %s2254_s8, %s2912_s8   ;;  %s2165_s30 = sphi %s2252_s30, %s2911_s30   ;;  %s2161_s29 = sphi %s2250_s29, %s2910_s29   ;;  %s2157_s0 = sphi %s2248_s0, %s2909_s0  }
  0x1c   : > { %2868 = sst [smem:[#allocation22_spill]] %s2177_s10  ;;  %s1624_s13 = sadd.s32 4294967294, %s2181_s11  }
  0x1d   : > { %p77_p5 = scmp.ne.s32.totalorder %s2173_s9, %s2169_s8  ;;  %p2854_p6 = scmp.eq.s32.totalorder %s2284_s12, 0 }
  0x1e   : > { %p105_p7 = scmp.ne.s32.totalorder %s2161_s29, %s2157_s0  ;;  %p177_p10 = scmp.eq.s32.totalorder %s1624_s13, 1 }
  0x1f   : > { %p2295_p9 = por %p2854_p6, %p77_p5  ;;  %p1625_p12 = scmp.ge.s32.totalorder %s2181_s11, 1 }
  0x20   : > { %p2301_p11 = por %p105_p7, %p2854_p6  ;;  %p2306_p13 = por %p177_p10, %p77_p5 }
  0x21   : > { %s2869_s14 = scalar_select %p2295_p9, 1, 0 }
  0x22   : > { %s2870_s15 = scalar_select %p2301_p11, 1, 0 }
  0x23   : > { %s2871_s16 = scalar_select %p2306_p13, 1, 0 }
  0x24   : > { %p2310_p0 = por %p177_p10, %p105_p7  ;;  %p212_p1 = scmp.lt.s32.totalorder %s2181_s11, 3 }
  0x25   : > { %s2184_s19 = smov [#allocation11]   ;;  %p2857_p8 = scmp.eq.s32.totalorder %s2181_s11, 0 }
  0x26   : > { %s2872_s17 = scalar_select %p2310_p0, 1, 0 }
  0x27   : > { %p2316_p3 = pnand %p1625_p12, %p212_p1  ;;  %s227_s20 = sshll.u32 %s2184_s19, 4  ;;  %s228_s20 = int_to_ptr.vmem [resolvable:$true] %s227_s20 }
  0x28   : > { %2873 = sst [smem:[#allocation23_spill]] %s2872_s17  ;;  %p71_p7 = scmp.ne.s32.totalorder %s2177_s10, %s2173_s9 }
  0x29   : > { %s2874_s18 = scalar_select %p2316_p3, 1, 0 }
  0x2a   : > { %p1796_p4 = pneg %p2316_p3  ;;  %p2856_p10 = scmp.lt.s32.totalorder %s2181_s11, 2 }
  0x2b   : > { %s1981_s23 = scalar_lea.vmem %s228_s20, 512  ;;  %p1989_p11 = scmp.lt.s32.totalorder %s228_s20, %s228_s20 }
  0x2c   : > { %p2326_p13 = pnand %p1796_p4, %p2854_p6  ;;  %p1982_p1 = scmp.ne.s32.totalorder %s228_s20, %s1981_s23 }
  0x2d   : > { %p1990_p9 = scmp.lt.s32.totalorder %s1981_s23, %s1981_s23 }
  0x2e   : > { %p1972_p12 = pneg %p2326_p13 }
  0x2f   : > { %p1991_p3 = por %p1990_p9, %p1989_p11 }
  0x30   : > { %p1984_p2 = pnand %p1982_p1, %p1972_p12 }
  0x32   : > { %p1985_p0 = pneg %p1984_p2 }
  0x34   : > { %p1992_p5 = pnand %p1991_p3, %p1985_p0 }
  0x36   : > { %1995 = shalt.err (!%p1992_p5)
}
  0x37   : > { %s2185_s24 = smov 64   ;;  %s2186_s25 = smov 4  }
  0x38   : > { %s2876_s4 = sld [smem:[#allocation27_spill]]  ;;  %p73_p9 = por %p2857_p8, %p71_p7 }
  0x39   : > { %p2877_p11 = scmp.eq.s32.totalorder %s2284_s12, 1  ;;  %s244_s13 = sand.u32 1, %s2177_s10  }
  0x3a   : > { %s1692_s19 = sshll.u32 %s2181_s11, 6  ;;  %s1628_s23 = sshll.u32 %s244_s13, 2 }
  0x3b   : > { %p2351_p0 = por %p2877_p11, %p71_p7  ;;  %s2879_s2 = sld [smem:[#allocation26_spill]] }
  0x3c   : > { %s2370_s26 = scalar_lea.sflag [#allocation7], %s244_s13 }
  0x3d   : > { %s2878_s28 = scalar_select %p2351_p0, 1, 0 }
  0x3e   : > { %1799 = dma.hbm_to_vmem [thread:$0]  (!%p2326_p13), %s2876_s4, 512, %s228_s20, [#allocation10], %s2185_s24, %s2185_s24, %s2186_s25  }
  0x3f   : > { %s248_s20 = scalar_lea.vmem [#allocation6], %s1628_s23  ;;  %p2364_p13 = pnand %p2856_p10, %p73_p9 }
  0x40   : > { %s255_s24 = sshll.u32 %s248_s20, 4  ;;  %s2368_s24 = int_to_ptr.vmem [resolvable:$true] %s255_s24 }
  0x41   : > { %s2360_s21 = scalar_lea.hbm %s2879_s2, %s1692_s19  ;;  %p1998_p3 = pneg %p2364_p13 }
  0x42   : > { %s1996_s27 = scalar_lea.hbm %s2360_s21, 64  ;;  %s2001_s19 = scalar_lea.hbm %s2879_s2, 256 }
  0x43   : > { %p1997_p2 = scmp.ne.s32.totalorder %s2360_s21, %s1996_s27  ;;  %p2002_p7 = scmp.lt.s32.totalorder %s2360_s21, %s2879_s2 }
  0x44   : > { %p2003_p12 = scmp.lt.s32.totalorder %s2001_s19, %s1996_s27 }
  0x45   : > { %p1999_p4 = pnand %p1998_p3, %p1997_p2 }
  0x46   : > { %p2004_p1 = por %p2003_p12, %p2002_p7 }
  0x47   : > { %p2000_p5 = pneg %p1999_p4 }
  0x49   : > { %p2005_p9 = pnand %p2004_p1, %p2000_p5 }
  0x4b   : > { %2008 = shalt.err (!%p2005_p9)
}
  0x4c   : > { %s2009_s13 = scalar_lea.vmem %s2368_s24, 64  ;;  %s2187_s4 = smov [#allocation6]  }
  0x4d   : > { %p2010_p11 = scmp.ne.s32.totalorder %s2368_s24, %s2009_s13  ;;  %s2014_s0 = sshll.u32 %s2187_s4, 4  ;;  %s2015_s0 = int_to_ptr.vmem [resolvable:$false] %s2014_s0 }
  0x4e   : > { %s2016_s17 = scalar_lea.vmem %s2015_s0, 128  ;;  %p2017_p4 = scmp.lt.s32.totalorder %s2368_s24, %s2015_s0 }
  0x4f   : > { %p2012_p6 = pnand %p2010_p11, %p1998_p3  ;;  %p2018_p10 = scmp.lt.s32.totalorder %s2016_s17, %s2009_s13 }
  0x51   : > { %p2013_p2 = pneg %p2012_p6  ;;  %p2019_p8 = por %p2018_p10, %p2017_p4 }
  0x53   : > { %p2020_p0 = pnand %p2019_p8, %p2013_p2 }
  0x55   : > { %2023 = shalt.err (!%p2020_p0)
}
  0x56   : > { %s2859_s27 = smov 16   ;;  %s2860_s4 = smov 1  }
  0x57   : > { %1803 = dma.hbm_to_vmem [thread:$0]  (!%p2364_p13), %s2360_s21, 64, %s2368_s24, %s2370_s26, %s2859_s27, %s2859_s27, %s2860_s4  }
  0x58   : > { %s2395_s0 = sadd.s32 1, %s2181_s11   ;;  %s87_s19 = ssub.s32 1, %s2181_s11 }
  0x59   : > { %2881 = sst [smem:[#allocation24_spill]] %s2395_s0  ;;  %s61_s22 = ssub.s32 %s2181_s11, %s2395_s0 }
  0x5a   : > { %p62_p6 = scmp.eq.s32.totalorder %s61_s22, 0  ;;  %s88_s23 = ssub.s32 1, %s2395_s0 }
  0x5b   : > { %s92_s20 = sadd.s32 1, %s2165_s30  ;;  %s2882_s13 = sadd.s32 1, %s2177_s10 }
  0x5c   : > { %s2405_s17 = scalar_select %p62_p6, %s2177_s10, %s2882_s13  }
  0x5d   : > { %s89_s2 = ssub.s32 %s87_s19, %s88_s23  ;;  %p99_p8 = scmp.ne.s32.totalorder %s2165_s30, %s2161_s29 }
  0x5e   : > { %2883 = sst [smem:[#allocation25_spill]] %s2405_s17  ;;  %p90_p10 = scmp.eq.s32.totalorder %s89_s2, 0 }
  0x5f   : > { %s265_s25 = sand.u32 1, %s2181_s11   ;;  %p2884_p0 = scmp.eq.s32.totalorder %s2181_s11, 0 }
  0x60   : > { %p2885_p13 = scmp.eq.s32.totalorder %s2284_s12, 1  ;;  %s267_s26 = sand.u32 1, %s2165_s30  }
  0x61   : > { %p101_p3 = por %p99_p8, %p2884_p0  ;;  %s1631_s22 = sshll.u32 %s267_s26, 2 }
  0x62   : > { %p2414_p5 = por %p2885_p13, %p99_p8  ;;  %s1693_s27 = sshll.u32 %s87_s19, 6 }
  0x63   : > { %s2419_s24 = scalar_select %p90_p10, %s2165_s30, %s92_s20  }
  0x64   : > { %s2886_s21 = scalar_select %p2414_p5, 1, 0 }
  0x65   : > { %s1537_s17 = scalar_lea.hbm %s2845_s3, %s1693_s27  ;;  %s269_s2 = scalar_lea.vmem [#allocation9], %s1631_s22 }
  0x66   : > { %s2425_s23 = scalar_lea.hbm %s1537_s17, 128  ;;  %s278_s10 = sshll.u32 %s269_s2, 4  ;;  %s2427_s10 = int_to_ptr.vmem [resolvable:$true] %s278_s10 }
  0x67   : > { %p2887_p7 = scmp.lt.s32.totalorder %s2181_s11, 2  ;;  %s2435_s20 = scalar_lea.sflag [#allocation10], %s265_s25 }
  0x68   : > { %s2052_s19 = scalar_lea.hbm %s1537_s17, 192  ;;  %s2029_s26 = scalar_lea.hbm %s2845_s3, 256 }
  0x69   : > { %p2431_p12 = pnand %p2887_p7, %p101_p3  ;;  %p2025_p1 = scmp.ne.s32.totalorder %s2425_s23, %s2052_s19 }
  0x6a   : > { %p2030_p4 = scmp.lt.s32.totalorder %s2425_s23, %s2845_s3  ;;  %p2031_p6 = scmp.lt.s32.totalorder %s2029_s26, %s2052_s19 }
  0x6b   : > { %p2026_p9 = pneg %p2431_p12 }
  0x6c   : > { %p2032_p8 = por %p2031_p6, %p2030_p4 }
  0x6d   : > { %p2027_p11 = pnand %p2026_p9, %p2025_p1 }
  0x6f   : > { %p2028_p2 = pneg %p2027_p11 }
  0x71   : > { %p2033_p10 = pnand %p2032_p8, %p2028_p2 }
  0x73   : > { %2036 = shalt.err (!%p2033_p10)
}
  0x74   : > { %s2037_s17 = scalar_lea.vmem %s2427_s10, 64  ;;  %s2190_s25 = smov [#allocation9]  }
  0x75   : > { %p2038_p0 = scmp.ne.s32.totalorder %s2427_s10, %s2037_s17  ;;  %s2042_s2 = sshll.u32 %s2190_s25, 4  ;;  %s2043_s2 = int_to_ptr.vmem [resolvable:$false] %s2042_s2 }
  0x76   : > { %s2044_s27 = scalar_lea.vmem %s2043_s2, 128  ;;  %p2045_p7 = scmp.lt.s32.totalorder %s2427_s10, %s2043_s2 }
  0x77   : > { %p2040_p3 = pnand %p2038_p0, %p2026_p9  ;;  %p2046_p1 = scmp.lt.s32.totalorder %s2044_s27, %s2037_s17 }
  0x79   : > { %p2041_p13 = pneg %p2040_p3  ;;  %p2047_p11 = por %p2046_p1, %p2045_p7 }
  0x7b   : > { %p2048_p5 = pnand %p2047_p11, %p2041_p13 }
  0x7d   : > { %2051 = shalt.err (!%p2048_p5)
}
  0x7e   : > { %s2889_s19 = smov 1   ;;  %s2890_s4 = smov 16  }
  0x7f   : > { %1806 = dma.hbm_to_vmem [thread:$0]  (!%p2431_p12), %s2425_s23, 64, %s2427_s10, %s2435_s20, %s2890_s4, %s2890_s4, %s2889_s19  }
  0x80   : > { %p2891_p9 = scmp.ne.s32.totalorder %s2874_s18, 0 }
  0x81   : > { %s2461_s26 = sand.u32 (!%p2891_p9), 1, %s2173_s9   ;;  %p2892_p5 = scmp.ne.s32.totalorder (!%p2891_p9), %s2869_s14, 0 }
  0x82   : > { %290 = sbr.rel (%p2891_p9) target bundleno = 3050 (0xbea), region = 40  ;;  %s1635_s22 = sshll.u32 (!%p2891_p9), %s2461_s26, 2 }
  0x83   : > { %s293_s13 = scalar_lea.sflag (!%p2891_p9), [#allocation7], %s2461_s26  ;;  %s2465_s17 = scalar_lea.vmem (!%p2891_p9), [#allocation6], %s1635_s22 }
  0x87   : > { %2136 = dma.done.wait (%p2892_p5), %s293_s13, 64  }
  0x88   : > { %2138 = vsyncadd (%p2892_p5), %s293_s13, 4294967232  ;;  %s301_s10 = sand.u32 1, %s2284_s12   ;;  %s2473_s18 = sand.u32 1, %s2161_s29  }
  0x89   : > { %s1636_s0 = sshll.u32 %s2473_s18, 2  ;;  %s302_s23 = scalar_lea.sflag [#allocation10], %s301_s10 }
  0x8a   : > { %s2476_s20 = scalar_lea.vmem [#allocation9], %s1636_s0  ;;  %p2893_p12 = scmp.ne.s32.totalorder %s2870_s15, 0 }
  0x8c   : > { %2140 = dma.done.wait (%p2893_p12), %s302_s23, 64  }
  0x8d   : > { %2142 = vsyncadd (%p2893_p12), %s302_s23, 4294967232  ;;  %p2894_p2 = scmp.eq.s32.totalorder %s2284_s12, 0 }
  0x8f   : > { %2144 = dma.done.wait (%p2894_p2), [#allocation10], 512   ;;  %p2895_p4 = pmov %p2894_p2 }
  0x90   : > { %s1638_s14 = sshll.u32 %s2461_s26, 3  ;;  %s1639_s25 = sshll.u32 %s2473_s18, 3 }
  0x91   : > { %2146 = vsyncadd (%p2895_p4), [#allocation10], 4294966784  ;;  %s2488_s2 = scalar_lea.vmem [#allocation12], %s1638_s14  ;;  %s2490_s27 = scalar_lea.vmem [#allocation13], %s1639_s25 }
  0x92   : > { %p2896_p6 = scmp.ne.s32.totalorder %s2284_s12, 0 }
  0x94   : > { %358 = sbr.rel (%p2896_p6) target bundleno = 156 (0x9c), region = 56 }
  0x99   : > { %vm359_vm0 = vcmask 254976   ;;  %v2191_v0 = vmov 0.0  }
  0x9a   : > { %360 = vst.msk [vmem:[#allocation2] sm:$0x3] %vm359_vm0, %v2191_v0  ;;  %361 = vst.msk [vmem:[#allocation2 + $0x2] sm:$0x3] %vm359_vm0, %v2191_v0 }
  0x9b   : > { %362 = vst.msk [vmem:[#allocation3] sm:$0x3] %vm359_vm0, %v2191_v0  ;;  %363 = vst.msk [vmem:[#allocation3 + $0x2] sm:$0x3] %vm359_vm0, %v2191_v0 }
  0x9c PF: > { %s2495_s15 = sshll.u32 %s2284_s12, 2  ;;  %s365_s19 = ssub.s32 1, %s2284_s12  ;;  %v2501_v1 = vld [vmem:[%s2843_s1] sm:$0x3]  ;;  %v369_v2 = vld [vmem:[#allocation11] sm:$0xf]  ;;  %v390_v4 = vlaneseq }
  0x9d   : > { %s2505_s13 = sshll.u32 %s365_s19, 2  ;;  %s367_s10 = sld [smem:[#allocation5]]  ;;  %v370_v3 = vld [vmem:[#allocation11 + $0x4] sm:$0xf]  ;;  %v371_v5 = vld [vmem:[#allocation11 + $0x8] sm:$0xf] }
  0x9e   : > { %v372_v6 = vld [vmem:[#allocation11 + $0xc] sm:$0xf]  ;;  %v373_v7 = vld [vmem:[#allocation11 + $0x10] sm:$0xf]  ;;  %v374_v8 = vld [vmem:[#allocation11 + $0x14] sm:$0xf] }
  0x9f   : > { %v375_v9 = vld [vmem:[#allocation11 + $0x18] sm:$0xf]  ;;  %v376_v10 = vld [vmem:[#allocation11 + $0x1c] sm:$0xf]  ;;  %v2192_v12 = vmov 1966171168  }
  0xa0   : > { %v1643_v11 = vld.sshfl [vmem:[%s2847_s5] sm:$0x11 pattern:$0x75316420]  ;;  %v388_v13 = vunpack.c.l.s4 %v2192_v12  ;;  %v2510_v14 = vshrl.u32 %v390_v4, 7 }
  0xa1   : > { %v386_v15 = vcombine.high %v1643_v11, %v1643_v11 }
  0xa2   : > { %v389_v16 = vunpack.c.0.s8 %v388_v13 }
  0xa3   : > { %p401_p8 = scmp.lt.s32.totalorder %s2495_s15, %s367_s10  ;;  %p402_p10 = scmp.lt.s32.totalorder %s2505_s13, %s367_s10 }
  0xa4   : > { %v392_v17 = vsub.s32 %v389_v16, %v2510_v14 }
  0xa5   : > { %p2515_p0 = por %p402_p10, %p401_p8 }
  0xa6   : > { %v393_v18 = vrot.slane %v1643_v11, %v392_v17  ;;  %v400_v19 = vrot.slane %v386_v15, %v392_v17  ;;  %v2521_v20 = vcombine.low (%p2515_p0), %v371_v5, %v372_v6  ;;  %v2523_v21 = vcombine.low (%p2515_p0), %v375_v9, %v376_v10  ;;  %v408_v23 = vld [vmem:[#allocation2] sm:$0x3] (%p2515_p0)  ;;  %v409_v24 = vld [vmem:[#allocation2 + $0x2] sm:$0x3] (%p2515_p0)  ;;  %s2195_s25 = smov (%p2515_p0), 32   ;;  %s2196_s4 = smov (%p2515_p0), 64  }
  0xa7   : > { %406 = sbr.rel (!%p2515_p0) target bundleno = 2991 (0xbaf), region = 60  ;;  %v2193_v22 = vmov (%p2515_p0), 0.0   ;;  %v2529_v25 = vcombine.low (%p2515_p0), %v369_v2, %v370_v3  ;;  %v2531_v26 = vcombine.low (%p2515_p0), %v373_v7, %v374_v8  ;;  %v1653_v27 = vld.sshfl [vmem:[#allocation3] sm:$0x3 pattern:$0x76325410] (%p2515_p0)  ;;  %v410_v28 = vpack.c.bf16 (%p2515_p0), %v408_v23, %v408_v23 }
  0xa8   : > { %1720 = vmatprep.subr.bf16.mxu0 (%p2515_p0), %v2193_v22  ;;  %1728 = vmatprep.subr.bf16.mxu1 (%p2515_p0), %v2193_v22  ;;  %vm2194_vm1 = vmmov (%p2515_p0), 0   ;;  %v411_v29 = vpack.c.bf16 (%p2515_p0), %v409_v24, %v409_v24  ;;  %vm424_vm2 = vcmask (%p2515_p0), 261120   ;;  %v1654_v30 = vld.sshfl [vmem:[#allocation3 + $0x2] sm:$0x3 pattern:$0x76325410] (%p2515_p0)  ;;  %v614_v10 = vstv (%p2515_p0), %s2495_s15 }
  0xa9   : > { %1721 = vmatpush3.bf16.msra.mxu0 (%p2515_p0), %v2521_v20  ;;  %1729 = vmatpush3.bf16.msra.mxu1 (%p2515_p0), %v2523_v21  ;;  %v523_v31 = vld [vmem:[%s2465_s17] sm:$0x1] (%p2515_p0)  ;;  %v1650_v32 = vld [vmem:[%s2476_s20 + $0x3] sm:$0x1] (%p2515_p0)  ;;  %v532_v33 = vsub.s32 (%p2515_p0), 0, %v2510_v14  ;;  %v2197_v0 = vmov (%p2515_p0), 0   ;;  %vm615_vm3 = vcmp.lt.s32.totalorder (%p2515_p0), %v614_v10, %v2501_v1 }
  0xaa   : > { %1722 = vmatprep.subr.bf16.mxu0 (%p2515_p0), %v2193_v22  ;;  %1730 = vmatprep.subr.bf16.mxu1 (%p2515_p0), %v2193_v22  ;;  %v526_v34 = vunpack.c.l.bf16 (%p2515_p0), %v523_v31  ;;  %v527_v35 = vunpack.c.l.bf16 (%p2515_p0), %v1650_v32  ;;  %s407_s22 = sadd.s32 (%p2515_p0), 3, %s2505_s13  ;;  %v620_v13 = vsel (%p2515_p0), %vm615_vm3, 1, %v2197_v0  ;;  %v2198_v17 = vmov (%p2515_p0), 1983009808   ;;  %s2199_s10 = smov (%p2515_p0), 96  }
  0xab   : > { %1724 = vmatprep.mubr.msk.bf16.mxu0 (%p2515_p0), %vm2194_vm1, %v2193_v22  ;;  %1732 = vmatprep.mubr.msk.bf16.mxu1 (%p2515_p0), %vm2194_vm1, %v2193_v22  ;;  %v2562_v36 = vrot.slane (%p2515_p0), %v393_v18, %v532_v33  ;;  %v2564_v37 = vrot.slane (%p2515_p0), %v400_v19, %v532_v33  ;;  %v616_v12 = vstv (%p2515_p0), %s407_s22  ;;  %v633_v18 = vunpack.c.l.s4 (%p2515_p0), %v2198_v17  ;;  %s690_s0 = sadd.s32 (%p2515_p0), 1, %s2495_s15  ;;  %s691_s23 = sadd.s32 (%p2515_p0), 2, %s2505_s13 }
  0xac   : > { %574 = vrot.lane.b32.xlu1 %v1653_v27, %s2195_s25  ;;  %1892 = vset.pattern.permute.xlu0 %v2197_v0  ;;  %vm617_vm4 = vcmp.lt.s32.totalorder %v616_v12, %v2501_v1  ;;  %vm654_vm6 = vcmask 254976   ;;  %s940_s22 = sadd.s32 2, %s2495_s15 }
  0xad   : > { %1723 = vmatpush3.bf16.msra.mxu0 %v2529_v25  ;;  %1731 = vmatpush3.bf16.msra.mxu1 %v2531_v26  ;;  %v621_v16 = vsel %vm617_vm4, 1, %v2197_v0  ;;  %v634_v19 = vunpack.c.0.s8 %v633_v18 }
  0xae   : > { %1736 = vmatprep.subr.bf16.mxu0 %v2193_v22  ;;  %1744 = vmatprep.subr.bf16.mxu1 %v2193_v22 }
  0xaf   : > { %1893 = vset.pattern.permute.xlu1 %v2197_v0  ;;  %v2583_v24 = vsub.s32 %v634_v19, %v2510_v14 }
  0xb0   : > { %1725 = vmatmul.mubr.msk.bf16.vlgmr.msra.gmra.mxu0 %vm424_vm2, %v410_v28  ;;  %1733 = vmatmul.mubr.msk.bf16.vlgmr.msra.gmra.mxu1 %vm424_vm2, %v411_v29 }
  0xb1   : > { %576 = vrot.lane.b32.xlu1 %v1654_v30, %s2195_s25  ;;  %1737 = vmatpush3.bf16.msra.mxu0 %v2521_v20 }
  0xb2   : > { %1738 = vmatprep.subr.bf16.mxu0 %v2193_v22  ;;  %1745 = vmatpush3.bf16.msra.mxu1 %v2523_v21 }
  0xb3   : > { %1740 = vmatprep.mubr.msk.bf16.mxu0 %vm2194_vm1, %v2193_v22  ;;  %1746 = vmatprep.subr.bf16.mxu1 %v2193_v22 }
  0xb4   : > { %1748 = vmatprep.mubr.msk.bf16.mxu1 %vm2194_vm1, %v2193_v22 }
  0xb5   : > { %1739 = vmatpush3.bf16.msra.mxu0 %v2529_v25 }
  0xb6   : > { %1747 = vmatpush3.bf16.msra.mxu1 %v2531_v26  ;;  %1752 = vmatprep.subr.bf16.mxu0 %v2193_v22 }
  0xb7   : > { %1760 = vmatprep.subr.bf16.mxu1 %v2193_v22 }
 0x11e   : > { %v575_v2 = vpop.permute.xlu1 %574 }
 0x123   : > { %v577_v4 = vpop.permute.xlu1 %576 }
 0x170   : > { %v462_v38 = vpop.f32.mrf.mxu0  ;;  %v517_v39 = vpop.f32.mrf.mxu1 }
 0x171   : > { %v528_v40 = vadd.f32 %v526_v34, %v462_v38  ;;  %v529_v41 = vadd.f32 %v527_v35, %v517_v39  ;;  %v618_v35 = vld [vmem:[#allocation2] sm:$0x3] }
 0x172   : > { %v1726_v42 = vpop.f32.mrf.mxu0  ;;  %v1734_v43 = vpop.f32.mrf.mxu1 }
 0x173   : > { %v540_v44 = vadd.f32 %v2562_v36, %v528_v40  ;;  %v541_v45 = vadd.f32 %v2564_v37, %v529_v41  ;;  %v619_v41 = vld [vmem:[#allocation2 + $0x2] sm:$0x3]  ;;  %v657_v42 = vld [vmem:[#allocation3] sm:$0x3] }
 0x174   : > { %v465_v46 = vpop.f32.mrf.mxu0  ;;  %v520_v47 = vpop.f32.mrf.mxu1 }
 0x175   : > { %1894 = vtanh.f32 %v540_v44  ;;  %v1651_v52 = vmul.f32 -1.442695, %v540_v44  ;;  %v1652_v53 = vmul.f32 -1.442695, %v541_v45 }
 0x176   : > { %v1727_v48 = vpop.f32.mrf.mxu0  ;;  %v1735_v49 = vpop.f32.mrf.mxu1  ;;  %1896 = vtanh.f32 %v541_v45 }
 0x177   : > { %1898 = vpow2.f32 %v1651_v52  ;;  %v658_v48 = vld [vmem:[#allocation3 + $0x2] sm:$0x3] }
 0x178   : > { %1900 = vpow2.f32 %v1652_v53 }
 0x182   : > { %v1895_v50 = vpop.eup %1894 }
 0x183   : > { %584 = vrot.lane.b32.xlu0 %v1895_v50, %s2196_s4  ;;  %v1897_v51 = vpop.eup %1896 }
 0x184   : > { %v1899_v54 = vpop.eup %1898 }
 0x185   : > { %v548_v55 = vadd.f32 1.0, %v1899_v54  ;;  %v1901_v56 = vpop.eup %1900 }
 0x186   : > { %v549_v57 = vadd.f32 1.0, %v1901_v56 }
 0x187   : > { %586 = vrot.lane.b32.xlu0 %v1897_v51, %s2196_s4  ;;  %1902 = vrcp.f32 %v548_v55  ;;  %v1658_v55 = vld [vmem:[%s2465_s17 + $0x1] sm:$0x1] }
 0x188   : > { %1904 = vrcp.f32 %v549_v57  ;;  %v786_v56 = vunpack.c.l.bf16 %v1658_v55  ;;  %v1659_v57 = vld [vmem:[%s2476_s20 + $0x2] sm:$0x1] }
 0x194   : > { %v1903_v58 = vpop.eup %1902 }
 0x195   : > { %v1905_v61 = vpop.eup %1904  ;;  %v580_v3 = vmul.f32 %v1903_v58, %v575_v2 }
 0x196   : > { %v581_v7 = vmul.f32 %v1905_v61, %v577_v4 }
 0x1f5   : > { %v585_v59 = vpop.permute.xlu0 %584 }
 0x1f6   : > { %v590_v60 = vmul.f32 %v1903_v58, %v585_v59 }
 0x1f8   : > { %594 = vrot.lane.b32.xlu0 %v590_v60, %s2195_s25  ;;  %v787_v60 = vunpack.c.l.bf16 %v1659_v57 }
 0x1f9   : > { %v587_v62 = vpop.permute.xlu0 %586 }
 0x1fa   : > { %v591_v63 = vmul.f32 %v1905_v61, %v587_v62 }
 0x1fc   : > { %596 = vrot.lane.b32.xlu1 %v591_v63, %s2195_s25 }
 0x26a   : > { %v595_v5 = vpop.permute.xlu0 %594 }
 0x26b   : > { %v600_v6 = vadd.f32 %v595_v5, %v580_v3 }
 0x26d   : > { %1906 = vtanh.f32 %v600_v6  ;;  %v667_v31 = vrot.slane %v600_v6, %v2583_v24 }
 0x26e   : > { %v597_v8 = vpop.permute.xlu1 %596 }
 0x26f   : > { %v601_v9 = vadd.f32 %v597_v8, %v581_v7 }
 0x271   : > { %1908 = vtanh.f32 %v601_v9  ;;  %v674_v14 = vrot.slane %v601_v9, %v2583_v24 }
 0x27a   : > { %v1907_v11 = vpop.eup %1906 }
 0x27b   : > { %606 = vrot.lane.b32.xlu0 %v1907_v11, %s2196_s4 }
 0x27e   : > { %v1909_v15 = vpop.eup %1908 }
 0x27f   : > { %608 = vrot.lane.b32.xlu1 %v1909_v15, %s2196_s4  ;;  %623 = vperm.xlu0 %1892, %v620_v13  }
 0x283   : > { %626 = vperm.xlu1 %1893, %v621_v16  }
 0x2ed   : > { %v607_v23 = vpop.permute.xlu0 %606 }
 0x2ee   : > { %v612_v27 = vmul.f32 %v1903_v58, %v607_v23 }
 0x2f0   : > { %v638_v28 = vrot.slane %v612_v27, %v2583_v24 }
 0x2f1   : > { %v609_v29 = vpop.permute.xlu1 %608 }
 0x2f2   : > { %v613_v30 = vmul.f32 %v1905_v61, %v609_v29  ;;  %646 = vrot.lane.b32.xlu1 %v638_v28, %s2195_s25 }
 0x2f4   : > { %v645_v32 = vrot.slane %v613_v30, %v2583_v24 }
 0x2f6   : > { %648 = vrot.lane.b32.xlu0 %v645_v32, %s2195_s25  ;;  %675 = vrot.lane.b32.xlu1 %v667_v31, %s2199_s10 }
 0x2fa   : > { %677 = vrot.lane.b32.xlu0 %v674_v14, %s2199_s10  ;;  %v624_v34 = vpop.permute.xlu0 %623 }
 0x2fb   : > { %vm628_vm5 = vcmp.eq.s32.totalorder %v624_v34, 1 }
 0x2fe   : > { %v627_v33 = vpop.permute.xlu1 %626 }
 0x2ff   : > { %vm629_vm7 = vcmp.eq.s32.totalorder %v627_v33, 1 }
 0x364   : > { %v647_v38 = vpop.permute.xlu1 %646 }
 0x365   : > { %v652_v39 = vsel %vm628_vm5, %v647_v38, %v618_v35  ;;  %v685_v40 = vsel %vm628_vm5, %v647_v38, 0.0 }
 0x366   : > { %655 = vst.msk [vmem:[#allocation2] sm:$0x3] %vm654_vm6, %v652_v39  ;;  %687 = vst.msk [vmem:[%s2488_s2] sm:$0x3] %vm654_vm6, %v685_v40 }
 0x368   : > { %v649_v43 = vpop.permute.xlu0 %648  ;;  %v676_v44 = vpop.permute.xlu1 %675 }
 0x369   : > { %v653_v45 = vsel %vm629_vm7, %v649_v43, %v619_v41  ;;  %v686_v46 = vsel %vm629_vm7, %v649_v43, 0.0  ;;  %v681_v47 = vsel %vm628_vm5, %v676_v44, %v657_v42  ;;  %v864_v41 = vstv %s690_s0  ;;  %s941_s0 = sadd.s32 1, %s2505_s13 }
 0x36a   : > { %656 = vst.msk [vmem:[#allocation2 + $0x2] sm:$0x3] %vm654_vm6, %v653_v45  ;;  %1655 = vst.msk [vmem:[%s2490_s27 + $0x6] sm:$0x3] %vm654_vm6, %v686_v46  ;;  %vm865_vm8 = vcmp.lt.s32.totalorder %v864_v41, %v2501_v1  ;;  %v866_v43 = vstv %s691_s23 }
 0x36b   : > { %683 = vst.msk [vmem:[#allocation3] sm:$0x3] %vm654_vm6, %v681_v47  ;;  %v870_v44 = vsel %vm865_vm8, 1, %v2197_v0  ;;  %vm867_vm9 = vcmp.lt.s32.totalorder %v866_v43, %v2501_v1 }
 0x36c   : > { %v678_v49 = vpop.permute.xlu0 %677  ;;  %v871_v46 = vsel %vm867_vm9, 1, %v2197_v0 }
 0x36d   : > { %v682_v50 = vsel %vm629_vm7, %v678_v49, %v658_v48  ;;  %v692_v51 = vld [vmem:[#allocation2] sm:$0x3] }
 0x36e   : > { %684 = vst.msk [vmem:[#allocation3 + $0x2] sm:$0x3] %vm654_vm6, %v682_v50  ;;  %v694_v52 = vpack.c.bf16 %v692_v51, %v692_v51  ;;  %v868_v57 = vld [vmem:[#allocation2] sm:$0x3] }
 0x370   : > { %1741 = vmatmul.mubr.msk.bf16.vlgmr.msra.gmra.mxu0 %vm424_vm2, %v694_v52 }
 0x371   : > { %v693_v53 = vld [vmem:[#allocation2 + $0x2] sm:$0x3]  ;;  %1753 = vmatpush3.bf16.msra.mxu0 %v2521_v20  ;;  %1756 = vmatprep.mubr.msk.bf16.mxu0 %vm2194_vm1, %v2193_v22 }
 0x372   : > { %v695_v54 = vpack.c.bf16 %v693_v53, %v693_v53  ;;  %1754 = vmatprep.subr.bf16.mxu0 %v2193_v22  ;;  %v1662_v11 = vld.sshfl [vmem:[#allocation3] sm:$0x3 pattern:$0x76325410] }
 0x374   : > { %1749 = vmatmul.mubr.msk.bf16.vlgmr.msra.gmra.mxu1 %vm424_vm2, %v695_v54 }
 0x375   : > { %1761 = vmatpush3.bf16.msra.mxu1 %v2523_v21  ;;  %1755 = vmatpush3.bf16.msra.mxu0 %v2529_v25  ;;  %v1663_v12 = vld.sshfl [vmem:[#allocation3 + $0x2] sm:$0x3 pattern:$0x76325410] }
 0x376   : > { %1762 = vmatprep.subr.bf16.mxu1 %v2193_v22  ;;  %1764 = vmatprep.mubr.msk.bf16.mxu1 %vm2194_vm1, %v2193_v22 }
 0x377   : > { %1768 = vmatprep.subr.bf16.mxu0 %v2193_v22 }
 0x379   : > { %1763 = vmatpush3.bf16.msra.mxu1 %v2531_v26 }
 0x37a   : > { %1776 = vmatprep.subr.bf16.mxu1 %v2193_v22 }
 0x430   : > { %v733_v58 = vpop.f32.mrf.mxu0 }
 0x431   : > { %v788_v59 = vadd.f32 %v786_v56, %v733_v58 }
 0x432   : > { %v1742_v61 = vpop.f32.mrf.mxu0 }
 0x433   : > { %v790_v62 = vadd.f32 %v788_v59, %v2562_v36  ;;  %v869_v61 = vld [vmem:[#allocation2 + $0x2] sm:$0x3] }
 0x434   : > { %v736_v63 = vpop.f32.mrf.mxu0  ;;  %v776_v2 = vpop.f32.mrf.mxu1 }
 0x435   : > { %1910 = vtanh.f32 %v790_v62  ;;  %v789_v3 = vadd.f32 %v787_v60, %v776_v2  ;;  %v1660_v13 = vmul.f32 -1.442695, %v790_v62  ;;  %v906_v63 = vld [vmem:[#allocation3] sm:$0x3] }
 0x436   : > { %v1743_v4 = vpop.f32.mrf.mxu0  ;;  %v1750_v5 = vpop.f32.mrf.mxu1 }
 0x437   : > { %v791_v6 = vadd.f32 %v789_v3, %v2564_v37 }
 0x438   : > { %v779_v7 = vpop.f32.mrf.mxu1 }
 0x439   : > { %1912 = vtanh.f32 %v791_v6  ;;  %v1661_v15 = vmul.f32 -1.442695, %v791_v6  ;;  %v907_v6 = vld [vmem:[#allocation3 + $0x2] sm:$0x3] }
 0x43a   : > { %v1751_v8 = vpop.f32.mrf.mxu1  ;;  %1914 = vpow2.f32 %v1660_v13 }
 0x43b   : > { %1916 = vpow2.f32 %v1661_v15  ;;  %v1669_v15 = vld [vmem:[%s2476_s20 + $0x1] sm:$0x1] }
 0x442   : > { %v1911_v9 = vpop.eup %1910 }
 0x443   : > { %834 = vrot.lane.b32.xlu1 %v1911_v9, %s2196_s4 }
 0x446   : > { %v1913_v10 = vpop.eup %1912 }
 0x447   : > { %836 = vrot.lane.b32.xlu0 %v1913_v10, %s2196_s4  ;;  %824 = vrot.lane.b32.xlu1 %v1662_v11, %s2195_s25  ;;  %v1915_v16 = vpop.eup %1914 }
 0x448   : > { %v798_v17 = vadd.f32 1.0, %v1915_v16  ;;  %v1917_v18 = vpop.eup %1916 }
 0x449   : > { %v799_v19 = vadd.f32 1.0, %v1917_v18  ;;  %v1037_v18 = vunpack.c.l.bf16 %v1669_v15 }
 0x44a   : > { %1918 = vrcp.f32 %v798_v17 }
 0x44b   : > { %826 = vrot.lane.b32.xlu0 %v1663_v12, %s2195_s25  ;;  %1920 = vrcp.f32 %v799_v19 }
 0x457   : > { %v1919_v23 = vpop.eup %1918 }
 0x458   : > { %v1921_v29 = vpop.eup %1920 }
 0x4b5   : > { %v835_v27 = vpop.permute.xlu1 %834 }
 0x4b6   : > { %v840_v28 = vmul.f32 %v1919_v23, %v835_v27 }
 0x4b8   : > { %844 = vrot.lane.b32.xlu1 %v840_v28, %s2195_s25 }
 0x4b9   : > { %v837_v30 = vpop.permute.xlu0 %836  ;;  %v825_v32 = vpop.permute.xlu1 %824 }
 0x4ba   : > { %v841_v31 = vmul.f32 %v1921_v29, %v837_v30  ;;  %v830_v14 = vmul.f32 %v1919_v23, %v825_v32 }
 0x4bc   : > { %846 = vrot.lane.b32.xlu0 %v841_v31, %s2195_s25 }
 0x4bd   : > { %v827_v33 = vpop.permute.xlu0 %826 }
 0x4be   : > { %v831_v38 = vmul.f32 %v1921_v29, %v827_v33 }
 0x52a   : > { %v845_v34 = vpop.permute.xlu1 %844 }
 0x52b   : > { %v850_v35 = vadd.f32 %v845_v34, %v830_v14 }
 0x52d   : > { %1922 = vtanh.f32 %v850_v35  ;;  %v916_v52 = vrot.slane %v850_v35, %v2583_v24 }
 0x52e   : > { %v847_v39 = vpop.permute.xlu0 %846 }
 0x52f   : > { %v851_v40 = vadd.f32 %v847_v39, %v831_v38 }
 0x531   : > { %1924 = vtanh.f32 %v851_v40  ;;  %v923_v54 = vrot.slane %v851_v40, %v2583_v24 }
 0x53a   : > { %v1923_v42 = vpop.eup %1922 }
 0x53b   : > { %856 = vrot.lane.b32.xlu1 %v1923_v42, %s2196_s4 }
 0x53e   : > { %v1925_v45 = vpop.eup %1924 }
 0x53f   : > { %858 = vrot.lane.b32.xlu0 %v1925_v45, %s2196_s4  ;;  %873 = vperm.xlu1 %1893, %v870_v44  }
 0x543   : > { %876 = vperm.xlu0 %1892, %v871_v46  }
 0x5ad   : > { %v857_v47 = vpop.permute.xlu1 %856 }
 0x5ae   : > { %v862_v48 = vmul.f32 %v1919_v23, %v857_v47 }
 0x5b0   : > { %v888_v49 = vrot.slane %v862_v48, %v2583_v24 }
 0x5b1   : > { %v859_v50 = vpop.permute.xlu0 %858 }
 0x5b2   : > { %v863_v51 = vmul.f32 %v1921_v29, %v859_v50  ;;  %896 = vrot.lane.b32.xlu1 %v888_v49, %s2195_s25 }
 0x5b4   : > { %v895_v53 = vrot.slane %v863_v51, %v2583_v24 }
 0x5b6   : > { %898 = vrot.lane.b32.xlu0 %v895_v53, %s2195_s25  ;;  %924 = vrot.lane.b32.xlu1 %v916_v52, %s2199_s10 }
 0x5ba   : > { %926 = vrot.lane.b32.xlu0 %v923_v54, %s2199_s10  ;;  %v874_v55 = vpop.permute.xlu1 %873 }
 0x5bb   : > { %vm878_vm10 = vcmp.eq.s32.totalorder %v874_v55, 1 }
 0x5be   : > { %v877_v56 = vpop.permute.xlu0 %876 }
 0x5bf   : > { %vm879_vm11 = vcmp.eq.s32.totalorder %v877_v56, 1  ;;  %v1114_v56 = vstv %s940_s22 }
 0x5c0   : > { %vm1115_vm12 = vcmp.lt.s32.totalorder %v1114_v56, %v2501_v1 }
 0x624   : > { %v897_v58 = vpop.permute.xlu1 %896 }
 0x625   : > { %v902_v59 = vsel %vm878_vm10, %v897_v58, %v868_v57  ;;  %v934_v60 = vsel %vm878_vm10, %v897_v58, 0.0  ;;  %v1116_v58 = vstv %s941_s0 }
 0x626   : > { %904 = vst.msk [vmem:[#allocation2] sm:$0x3] %vm654_vm6, %v902_v59  ;;  %1664 = vst.msk [vmem:[%s2488_s2 + $0x2] sm:$0x3] %vm654_vm6, %v934_v60  ;;  %v1120_v59 = vsel %vm1115_vm12, 1, %v2197_v0  ;;  %vm1117_vm13 = vcmp.lt.s32.totalorder %v1116_v58, %v2501_v1 }
 0x628   : > { %v899_v62 = vpop.permute.xlu0 %898  ;;  %v925_v2 = vpop.permute.xlu1 %924 }
 0x629   : > { %v903_v3 = vsel %vm879_vm11, %v899_v62, %v869_v61  ;;  %v935_v4 = vsel %vm879_vm11, %v899_v62, 0.0  ;;  %v930_v5 = vsel %vm878_vm10, %v925_v2, %v906_v63  ;;  %v1121_v61 = vsel %vm1117_vm13, 1, %v2197_v0 }
 0x62a   : > { %905 = vst.msk [vmem:[#allocation2 + $0x2] sm:$0x3] %vm654_vm6, %v903_v3  ;;  %1665 = vst.msk [vmem:[%s2490_s27 + $0x4] sm:$0x3] %vm654_vm6, %v935_v4 }
 0x62b   : > { %932 = vst.msk [vmem:[#allocation3] sm:$0x3] %vm654_vm6, %v930_v5 }
 0x62c   : > { %v927_v7 = vpop.permute.xlu0 %926 }
 0x62d   : > { %v931_v8 = vsel %vm879_vm11, %v927_v7, %v907_v6  ;;  %v942_v9 = vld [vmem:[#allocation2] sm:$0x3] }
 0x62e   : > { %933 = vst.msk [vmem:[#allocation3 + $0x2] sm:$0x3] %vm654_vm6, %v931_v8  ;;  %v944_v10 = vpack.c.bf16 %v942_v9, %v942_v9 }
 0x630   : > { %1757 = vmatmul.mubr.msk.bf16.vlgmr.msra.gmra.mxu0 %vm424_vm2, %v944_v10  ;;  %v1118_v10 = vld [vmem:[#allocation2] sm:$0x3] }
 0x631   : > { %v943_v11 = vld [vmem:[#allocation2 + $0x2] sm:$0x3]  ;;  %1769 = vmatpush3.bf16.msra.mxu0 %v2521_v20  ;;  %1772 = vmatprep.mubr.msk.bf16.mxu0 %vm2194_vm1, %v2193_v22  ;;  %v1668_v20 = vld [vmem:[%s2465_s17 + $0x2] sm:$0x1] }
 0x632   : > { %v945_v12 = vpack.c.bf16 %v943_v11, %v943_v11  ;;  %1770 = vmatprep.subr.bf16.mxu0 %v2193_v22  ;;  %v1036_v13 = vunpack.c.l.bf16 %v1668_v20  ;;  %v1672_v14 = vld.sshfl [vmem:[#allocation3] sm:$0x3 pattern:$0x76325410] }
 0x634   : > { %1765 = vmatmul.mubr.msk.bf16.vlgmr.msra.gmra.mxu1 %vm424_vm2, %v945_v12 }
 0x635   : > { %1777 = vmatpush3.bf16.msra.mxu1 %v2523_v21  ;;  %1771 = vmatpush3.bf16.msra.mxu0 %v2529_v25  ;;  %v1673_v33 = vld.sshfl [vmem:[#allocation3 + $0x2] sm:$0x3 pattern:$0x76325410] }
 0x636   : > { %1778 = vmatprep.subr.bf16.mxu1 %v2193_v22  ;;  %1780 = vmatprep.mubr.msk.bf16.mxu1 %vm2194_vm1, %v2193_v22 }
 0x639   : > { %1779 = vmatpush3.bf16.msra.mxu1 %v2531_v26 }
 0x6f0   : > { %v983_v16 = vpop.f32.mrf.mxu0 }
 0x6f1   : > { %v1038_v17 = vadd.f32 %v1036_v13, %v983_v16  ;;  %v1119_v13 = vld [vmem:[#allocation2 + $0x2] sm:$0x3]  ;;  %v1156_v16 = vld [vmem:[#allocation3] sm:$0x3] }
 0x6f2   : > { %v1758_v19 = vpop.f32.mrf.mxu0 }
 0x6f3   : > { %v1040_v23 = vadd.f32 %v1038_v17, %v2562_v36 }
 0x6f4   : > { %v986_v27 = vpop.f32.mrf.mxu0  ;;  %v1026_v21 = vpop.f32.mrf.mxu1 }
 0x6f5   : > { %1926 = vtanh.f32 %v1040_v23  ;;  %v1039_v25 = vadd.f32 %v1037_v18, %v1026_v21  ;;  %v1670_v34 = vmul.f32 -1.442695, %v1040_v23  ;;  %v1157_v27 = vld [vmem:[#allocation3 + $0x2] sm:$0x3] }
 0x6f6   : > { %v1759_v28 = vpop.f32.mrf.mxu0  ;;  %v1766_v29 = vpop.f32.mrf.mxu1 }
 0x6f7   : > { %v1041_v30 = vadd.f32 %v1039_v25, %v2564_v37 }
 0x6f8   : > { %v1029_v22 = vpop.f32.mrf.mxu1 }
 0x6f9   : > { %1928 = vtanh.f32 %v1041_v30  ;;  %v1671_v35 = vmul.f32 -1.442695, %v1041_v30 }
 0x6fa   : > { %v1767_v26 = vpop.f32.mrf.mxu1  ;;  %1930 = vpow2.f32 %v1670_v34 }
 0x6fb   : > { %1932 = vpow2.f32 %v1671_v35  ;;  %v1678_v26 = vld [vmem:[%s2465_s17 + $0x3] sm:$0x1]  ;;  %s1190_s17 = sadd.s32 3, %s2495_s15 }
 0x702   : > { %v1927_v31 = vpop.eup %1926 }
 0x703   : > { %1084 = vrot.lane.b32.xlu1 %v1927_v31, %s2196_s4  ;;  %v1284_v31 = vunpack.c.l.bf16 %v1678_v26 }
 0x706   : > { %v1929_v32 = vpop.eup %1928 }
 0x707   : > { %1086 = vrot.lane.b32.xlu0 %v1929_v32, %s2196_s4  ;;  %1074 = vrot.lane.b32.xlu1 %v1672_v14, %s2195_s25  ;;  %v1931_v38 = vpop.eup %1930  ;;  %v1283_v32 = vld [vmem:[%s2476_s20] sm:$0x1] }
 0x708   : > { %v1048_v39 = vadd.f32 1.0, %v1931_v38  ;;  %v1933_v40 = vpop.eup %1932  ;;  %v1285_v34 = vunpack.c.l.bf16 %v1283_v32 }
 0x709   : > { %v1049_v41 = vadd.f32 1.0, %v1933_v40 }
 0x70a   : > { %1934 = vrcp.f32 %v1048_v39 }
 0x70b   : > { %1076 = vrot.lane.b32.xlu0 %v1673_v33, %s2195_s25  ;;  %1936 = vrcp.f32 %v1049_v41 }
 0x717   : > { %v1935_v42 = vpop.eup %1934 }
 0x718   : > { %v1937_v45 = vpop.eup %1936 }
 0x775   : > { %v1085_v43 = vpop.permute.xlu1 %1084 }
 0x776   : > { %v1090_v44 = vmul.f32 %v1935_v42, %v1085_v43 }
 0x778   : > { %1094 = vrot.lane.b32.xlu1 %v1090_v44, %s2195_s25 }
 0x779   : > { %v1087_v46 = vpop.permute.xlu0 %1086  ;;  %v1075_v48 = vpop.permute.xlu1 %1074 }
 0x77a   : > { %v1091_v47 = vmul.f32 %v1937_v45, %v1087_v46  ;;  %v1080_v49 = vmul.f32 %v1935_v42, %v1075_v48 }
 0x77c   : > { %1096 = vrot.lane.b32.xlu0 %v1091_v47, %s2195_s25 }
 0x77d   : > { %v1077_v50 = vpop.permute.xlu0 %1076 }
 0x77e   : > { %v1081_v53 = vmul.f32 %v1937_v45, %v1077_v50 }
 0x7ea   : > { %v1095_v51 = vpop.permute.xlu1 %1094 }
 0x7eb   : > { %v1100_v52 = vadd.f32 %v1095_v51, %v1080_v49 }
 0x7ed   : > { %1938 = vtanh.f32 %v1100_v52  ;;  %v1166_v5 = vrot.slane %v1100_v52, %v2583_v24 }
 0x7ee   : > { %v1097_v54 = vpop.permute.xlu0 %1096 }
 0x7ef   : > { %v1101_v55 = vadd.f32 %v1097_v54, %v1081_v53 }
 0x7f1   : > { %1940 = vtanh.f32 %v1101_v55  ;;  %v1173_v7 = vrot.slane %v1101_v55, %v2583_v24 }
 0x7fa   : > { %v1939_v57 = vpop.eup %1938 }
 0x7fb   : > { %1106 = vrot.lane.b32.xlu1 %v1939_v57, %s2196_s4 }
 0x7fe   : > { %v1941_v60 = vpop.eup %1940 }
 0x7ff   : > { %1108 = vrot.lane.b32.xlu0 %v1941_v60, %s2196_s4  ;;  %1123 = vperm.xlu1 %1893, %v1120_v59  }
 0x803   : > { %1126 = vperm.xlu0 %1892, %v1121_v61  }
 0x86d   : > { %v1107_v62 = vpop.permute.xlu1 %1106 }
 0x86e   : > { %v1112_v63 = vmul.f32 %v1935_v42, %v1107_v62 }
 0x870   : > { %v1138_v2 = vrot.slane %v1112_v63, %v2583_v24 }
 0x871   : > { %v1109_v3 = vpop.permute.xlu0 %1108 }
 0x872   : > { %v1113_v4 = vmul.f32 %v1937_v45, %v1109_v3  ;;  %1146 = vrot.lane.b32.xlu1 %v1138_v2, %s2195_s25 }
 0x874   : > { %v1145_v6 = vrot.slane %v1113_v4, %v2583_v24 }
 0x876   : > { %1148 = vrot.lane.b32.xlu0 %v1145_v6, %s2195_s25  ;;  %1174 = vrot.lane.b32.xlu1 %v1166_v5, %s2199_s10 }
 0x87a   : > { %1176 = vrot.lane.b32.xlu0 %v1173_v7, %s2199_s10  ;;  %v1124_v8 = vpop.permute.xlu1 %1123  ;;  %v1362_v7 = vstv %s1190_s17 }
 0x87b   : > { %vm1128_vm14 = vcmp.eq.s32.totalorder %v1124_v8, 1  ;;  %vm1363_vm0 = vcmp.lt.s32.totalorder %v1362_v7, %v2501_v1 }
 0x87e   : > { %v1127_v9 = vpop.permute.xlu0 %1126 }
 0x87f   : > { %vm1129_vm15 = vcmp.eq.s32.totalorder %v1127_v9, 1  ;;  %v1364_v9 = vstv %s2505_s13 }
 0x880   : > { %vm1365_vm1 = vcmp.lt.s32.totalorder %v1364_v9, %v2501_v1 }
 0x8e4   : > { %v1147_v11 = vpop.permute.xlu1 %1146 }
 0x8e5   : > { %v1152_v12 = vsel %vm1128_vm14, %v1147_v11, %v1118_v10  ;;  %v1184_v20 = vsel %vm1128_vm14, %v1147_v11, 0.0  ;;  %v1368_v10 = vsel %vm1363_vm0, 1, %v2197_v0 }
 0x8e6   : > { %1154 = vst.msk [vmem:[#allocation2] sm:$0x3] %vm654_vm6, %v1152_v12  ;;  %1674 = vst.msk [vmem:[%s2488_s2 + $0x4] sm:$0x3] %vm654_vm6, %v1184_v20  ;;  %v1369_v12 = vsel %vm1365_vm1, 1, %v2197_v0 }
 0x8e8   : > { %v1149_v15 = vpop.permute.xlu0 %1148  ;;  %v1175_v17 = vpop.permute.xlu1 %1174 }
 0x8e9   : > { %v1153_v18 = vsel %vm1129_vm15, %v1149_v15, %v1119_v13  ;;  %v1185_v19 = vsel %vm1129_vm15, %v1149_v15, 0.0  ;;  %v1180_v23 = vsel %vm1128_vm14, %v1175_v17, %v1156_v16 }
 0x8ea   : > { %1155 = vst.msk [vmem:[#allocation2 + $0x2] sm:$0x3] %vm654_vm6, %v1153_v18  ;;  %1675 = vst.msk [vmem:[%s2490_s27 + $0x2] sm:$0x3] %vm654_vm6, %v1185_v19 }
 0x8eb   : > { %1182 = vst.msk [vmem:[#allocation3] sm:$0x3] %vm654_vm6, %v1180_v23 }
 0x8ec   : > { %v1177_v21 = vpop.permute.xlu0 %1176 }
 0x8ed   : > { %v1181_v25 = vsel %vm1129_vm15, %v1177_v21, %v1157_v27  ;;  %v1191_v28 = vld [vmem:[#allocation2] sm:$0x3] }
 0x8ee   : > { %1183 = vst.msk [vmem:[#allocation3 + $0x2] sm:$0x3] %vm654_vm6, %v1181_v25  ;;  %v1193_v29 = vpack.c.bf16 %v1191_v28, %v1191_v28  ;;  %v1366_v27 = vld [vmem:[#allocation2] sm:$0x3] }
 0x8f0   : > { %1773 = vmatmul.mubr.msk.bf16.vlgmr.msra.gmra.mxu0 %vm424_vm2, %v1193_v29 }
 0x8f1   : > { %v1192_v30 = vld [vmem:[#allocation2 + $0x2] sm:$0x3] }
 0x8f2   : > { %v1194_v22 = vpack.c.bf16 %v1192_v30, %v1192_v30  ;;  %v1681_v49 = vld.sshfl [vmem:[#allocation3] sm:$0x3 pattern:$0x76325410]  ;;  %v1367_v29 = vld [vmem:[#allocation2 + $0x2] sm:$0x3] }
 0x8f4   : > { %1781 = vmatmul.mubr.msk.bf16.vlgmr.msra.gmra.mxu1 %vm424_vm2, %v1194_v22  ;;  %v1404_v22 = vld [vmem:[#allocation3] sm:$0x3] }
 0x9b0   : > { %v1232_v14 = vpop.f32.mrf.mxu0 }
 0x9b1   : > { %v1286_v33 = vadd.f32 %v1284_v31, %v1232_v14  ;;  %v1405_v14 = vld [vmem:[#allocation3 + $0x2] sm:$0x3] }
 0x9b2   : > { %v1774_v35 = vpop.f32.mrf.mxu0 }
 0x9b3   : > { %v1288_v38 = vadd.f32 %v1286_v33, %v2562_v36  ;;  %v1682_v36 = vld.sshfl [vmem:[#allocation3 + $0x2] sm:$0x3 pattern:$0x76325410] }
 0x9b4   : > { %v1235_v39 = vpop.f32.mrf.mxu0  ;;  %v1275_v40 = vpop.f32.mrf.mxu1 }
 0x9b5   : > { %1942 = vtanh.f32 %v1288_v38  ;;  %v1287_v41 = vadd.f32 %v1285_v34, %v1275_v40  ;;  %v1679_v50 = vmul.f32 -1.442695, %v1288_v38 }
 0x9b6   : > { %v1775_v42 = vpop.f32.mrf.mxu0  ;;  %v1782_v43 = vpop.f32.mrf.mxu1 }
 0x9b7   : > { %v1289_v44 = vadd.f32 %v1287_v41, %v2564_v37 }
 0x9b8   : > { %v1278_v45 = vpop.f32.mrf.mxu1 }
 0x9b9   : > { %1944 = vtanh.f32 %v1289_v44  ;;  %v1680_v51 = vmul.f32 -1.442695, %v1289_v44 }
 0x9ba   : > { %v1783_v46 = vpop.f32.mrf.mxu1  ;;  %1946 = vpow2.f32 %v1679_v50 }
 0x9bb   : > { %1948 = vpow2.f32 %v1680_v51 }
 0x9c2   : > { %v1943_v47 = vpop.eup %1942 }
 0x9c3   : > { %1332 = vrot.lane.b32.xlu1 %v1943_v47, %s2196_s4 }
 0x9c6   : > { %v1945_v48 = vpop.eup %1944 }
 0x9c7   : > { %1334 = vrot.lane.b32.xlu0 %v1945_v48, %s2196_s4  ;;  %1322 = vrot.lane.b32.xlu1 %v1681_v49, %s2195_s25  ;;  %v1947_v37 = vpop.eup %1946 }
 0x9c8   : > { %v1296_v52 = vadd.f32 1.0, %v1947_v37  ;;  %v1949_v53 = vpop.eup %1948 }
 0x9c9   : > { %v1297_v54 = vadd.f32 1.0, %v1949_v53 }
 0x9ca   : > { %1950 = vrcp.f32 %v1296_v52 }
 0x9cb   : > { %1324 = vrot.lane.b32.xlu0 %v1682_v36, %s2195_s25  ;;  %1952 = vrcp.f32 %v1297_v54 }
 0x9d7   : > { %v1951_v55 = vpop.eup %1950 }
 0x9d8   : > { %v1953_v58 = vpop.eup %1952 }
 0xa35   : > { %v1333_v56 = vpop.permute.xlu1 %1332 }
 0xa36   : > { %v1338_v57 = vmul.f32 %v1951_v55, %v1333_v56 }
 0xa38   : > { %1342 = vrot.lane.b32.xlu1 %v1338_v57, %s2195_s25 }
 0xa39   : > { %v1335_v59 = vpop.permute.xlu0 %1334  ;;  %v1323_v61 = vpop.permute.xlu1 %1322 }
 0xa3a   : > { %v1339_v60 = vmul.f32 %v1953_v58, %v1335_v59  ;;  %v1328_v62 = vmul.f32 %v1951_v55, %v1323_v61 }
 0xa3c   : > { %1344 = vrot.lane.b32.xlu0 %v1339_v60, %s2195_s25 }
 0xa3d   : > { %v1325_v63 = vpop.permute.xlu0 %1324 }
 0xa3e   : > { %v1329_v4 = vmul.f32 %v1953_v58, %v1325_v63 }
 0xaaa   : > { %v1343_v2 = vpop.permute.xlu1 %1342 }
 0xaab   : > { %v1348_v3 = vadd.f32 %v1343_v2, %v1328_v62 }
 0xaad   : > { %1954 = vtanh.f32 %v1348_v3  ;;  %v1414_v18 = vrot.slane %v1348_v3, %v2583_v24 }
 0xaae   : > { %v1345_v5 = vpop.permute.xlu0 %1344 }
 0xaaf   : > { %v1349_v6 = vadd.f32 %v1345_v5, %v1329_v4 }
 0xab1   : > { %1956 = vtanh.f32 %v1349_v6  ;;  %v1421_v0 = vrot.slane %v1349_v6, %v2583_v24 }
 0xaba   : > { %v1955_v8 = vpop.eup %1954 }
 0xabb   : > { %1354 = vrot.lane.b32.xlu1 %v1955_v8, %s2196_s4 }
 0xabe   : > { %v1957_v11 = vpop.eup %1956 }
 0xabf   : > { %1356 = vrot.lane.b32.xlu0 %v1957_v11, %s2196_s4  ;;  %1371 = vperm.xlu1 %1893, %v1368_v10  }
 0xac3   : > { %1374 = vperm.xlu0 %1892, %v1369_v12  }
 0xb2d   : > { %v1355_v20 = vpop.permute.xlu1 %1354 }
 0xb2e   : > { %v1360_v13 = vmul.f32 %v1951_v55, %v1355_v20 }
 0xb30   : > { %v1386_v15 = vrot.slane %v1360_v13, %v2583_v24 }
 0xb31   : > { %v1357_v16 = vpop.permute.xlu0 %1356 }
 0xb32   : > { %v1361_v17 = vmul.f32 %v1953_v58, %v1357_v16  ;;  %1394 = vrot.lane.b32.xlu1 %v1386_v15, %s2195_s25 }
 0xb34   : > { %v1393_v1 = vrot.slane %v1361_v17, %v2583_v24 }
 0xb36   : > { %1396 = vrot.lane.b32.xlu0 %v1393_v1, %s2195_s25  ;;  %1422 = vrot.lane.b32.xlu1 %v1414_v18, %s2199_s10 }
 0xb3a   : > { %1424 = vrot.lane.b32.xlu0 %v1421_v0, %s2199_s10  ;;  %v1372_v19 = vpop.permute.xlu1 %1371 }
 0xb3b   : > { %vm1376_vm2 = vcmp.eq.s32.totalorder %v1372_v19, 1 }
 0xb3e   : > { %v1375_v23 = vpop.permute.xlu0 %1374 }
 0xb3f   : > { %vm1377_vm3 = vcmp.eq.s32.totalorder %v1375_v23, 1 }
 0xba4   : > { %v1395_v21 = vpop.permute.xlu1 %1394 }
 0xba5   : > { %v1400_v25 = vsel %vm1376_vm2, %v1395_v21, %v1366_v27  ;;  %v1432_v28 = vsel %vm1376_vm2, %v1395_v21, 0.0 }
 0xba6   : > { %1402 = vst.msk [vmem:[#allocation2] sm:$0x3] %vm654_vm6, %v1400_v25  ;;  %1683 = vst.msk [vmem:[%s2488_s2 + $0x6] sm:$0x3] %vm654_vm6, %v1432_v28 }
 0xba8   : > { %v1397_v30 = vpop.permute.xlu0 %1396  ;;  %v1423_v26 = vpop.permute.xlu1 %1422 }
 0xba9   : > { %v1401_v24 = vsel %vm1377_vm3, %v1397_v30, %v1367_v29  ;;  %v1433_v31 = vsel %vm1377_vm3, %v1397_v30, 0.0  ;;  %v1428_v32 = vsel %vm1376_vm2, %v1423_v26, %v1404_v22 }
 0xbaa   : > { %1403 = vst.msk [vmem:[#allocation2 + $0x2] sm:$0x3] %vm654_vm6, %v1401_v24  ;;  %1436 = vst.msk [vmem:[%s2490_s27] sm:$0x3] %vm654_vm6, %v1433_v31 }
 0xbab   : > { %1430 = vst.msk [vmem:[#allocation3] sm:$0x3] %vm654_vm6, %v1428_v32 }
 0xbac   : > { %v1425_v33 = vpop.permute.xlu0 %1424 }
 0xbad   : > { %v1429_v34 = vsel %vm1377_vm3, %v1425_v33, %v1405_v14 }
 0xbae   : > { %1431 = vst.msk [vmem:[#allocation3 + $0x2] sm:$0x3] %vm654_vm6, %v1429_v34 }
 0xbaf PF: > { %1439 = sbr.rel (%p2515_p0) target bundleno = 3001 (0xbb9), region = 64 }
 0xbb4   : > { %vm1440_vm4 = vcmask 254976   ;;  %v2200_v35 = vmov 0.0  }
 0xbb5   : > { %1441 = vst.msk [vmem:[%s2488_s2] sm:$0x3] %vm1440_vm4, %v2200_v35  ;;  %1442 = vst.msk [vmem:[%s2488_s2 + $0x2] sm:$0x3] %vm1440_vm4, %v2200_v35 }
 0xbb6   : > { %1443 = vst.msk [vmem:[%s2488_s2 + $0x4] sm:$0x3] %vm1440_vm4, %v2200_v35  ;;  %1444 = vst.msk [vmem:[%s2488_s2 + $0x6] sm:$0x3] %vm1440_vm4, %v2200_v35 }
 0xbb7   : > { %1445 = vst.msk [vmem:[%s2490_s27] sm:$0x3] %vm1440_vm4, %v2200_v35  ;;  %1446 = vst.msk [vmem:[%s2490_s27 + $0x2] sm:$0x3] %vm1440_vm4, %v2200_v35 }
 0xbb8   : > { %1447 = vst.msk [vmem:[%s2490_s27 + $0x4] sm:$0x3] %vm1440_vm4, %v2200_v35  ;;  %1448 = vst.msk [vmem:[%s2490_s27 + $0x6] sm:$0x3] %vm1440_vm4, %v2200_v35 }
 0xbb9 PF: > { %s1694_s20 = sshll.u32 %s2284_s12, 7  ;;  %s1468_s25 = sshll.u32 %s2488_s2, 4  ;;  %s2748_s25 = int_to_ptr.vmem [resolvable:$true] %s1468_s25 }
 0xbba   : > { %s2745_s14 = scalar_lea.hbm %s2848_s6, %s1694_s20  ;;  %s1450_s4 = scalar_lea.sflag [#allocation8], %s2461_s26 }
 0xbbb   : > { %s2053_s10 = scalar_lea.vmem %s2748_s25, 128  ;;  %p2898_p13 = scmp.ne.s32.totalorder %s2878_s28, 0 }
 0xbbc   : > { %p2054_p3 = scmp.ne.s32.totalorder %s2748_s25, %s2053_s10  ;;  %s2201_s23 = smov [#allocation12]  }
 0xbbd   : > { %s2057_s22 = sshll.u32 %s2201_s23, 4  ;;  %s2058_s22 = int_to_ptr.vmem [resolvable:$false] %s2057_s22 }
 0xbbe   : > { %p2055_p7 = pnand %p2054_p3, %p2898_p13  ;;  %s2059_s0 = scalar_lea.vmem %s2058_s22, 256 }
 0xbbf   : > { %p2060_p11 = scmp.lt.s32.totalorder %s2748_s25, %s2058_s22  ;;  %p2061_p9 = scmp.lt.s32.totalorder %s2059_s0, %s2053_s10 }
 0xbc0   : > { %p2056_p1 = pneg %p2055_p7 }
 0xbc1   : > { %p2062_p5 = por %p2061_p9, %p2060_p11 }
 0xbc3   : > { %p2063_p12 = pnand %p2062_p5, %p2056_p1 }
 0xbc5   : > { %2066 = shalt.err (!%p2063_p12)
}
 0xbc6   : > { %s2067_s2 = scalar_lea.hbm %s2745_s14, 128  ;;  %s2071_s15 = scalar_lea.hbm %s2848_s6, 256 }
 0xbc7   : > { %p2068_p2 = scmp.ne.s32.totalorder %s2745_s14, %s2067_s2  ;;  %p2072_p8 = scmp.lt.s32.totalorder %s2745_s14, %s2848_s6 }
 0xbc8   : > { %p2073_p10 = scmp.lt.s32.totalorder %s2071_s15, %s2067_s2 }
 0xbc9   : > { %p2069_p4 = pnand %p2068_p2, %p2898_p13 }
 0xbca   : > { %p2074_p0 = por %p2073_p10, %p2072_p8 }
 0xbcb   : > { %p2070_p6 = pneg %p2069_p4 }
 0xbcd   : > { %p2075_p3 = pnand %p2074_p0, %p2070_p6 }
 0xbcf   : > { %2078 = shalt.err (!%p2075_p3)
}
 0xbd0   : > { %s2202_s10 = smov 32   ;;  %s2203_s22 = smov 2  }
 0xbd1   : > { %1792 = dma.vmem_to_hbm [thread:$0]  (%p2898_p13), %s2748_s25, 128, %s2745_s14, %s1450_s4, %s2202_s10, %s2202_s10, %s2203_s22  }
 0xbd2   : > { %s1695_s0 = sshll.u32 %s365_s19, 7  ;;  %s1485_s2 = sshll.u32 %s2490_s27, 4  ;;  %s2784_s2 = int_to_ptr.vmem [resolvable:$true] %s1485_s2 }
 0xbd3   : > { %s2782_s15 = scalar_lea.hbm %s2849_s7, %s1695_s0  ;;  %s1455_s13 = scalar_lea.sflag [#allocation14], %s2473_s18 }
 0xbd4   : > { %s2079_s28 = scalar_lea.vmem %s2784_s2, 128  ;;  %p2899_p1 = scmp.ne.s32.totalorder %s2886_s21, 0 }
 0xbd5   : > { %p2080_p7 = scmp.ne.s32.totalorder %s2784_s2, %s2079_s28  ;;  %s2204_s26 = smov [#allocation13]  }
 0xbd6   : > { %s2083_s12 = sshll.u32 %s2204_s26, 4  ;;  %s2084_s12 = int_to_ptr.vmem [resolvable:$false] %s2083_s12 }
 0xbd7   : > { %p2081_p11 = pnand %p2080_p7, %p2899_p1  ;;  %s2085_s27 = scalar_lea.vmem %s2084_s12, 256 }
 0xbd8   : > { %p2086_p13 = scmp.lt.s32.totalorder %s2784_s2, %s2084_s12  ;;  %p2087_p5 = scmp.lt.s32.totalorder %s2085_s27, %s2079_s28 }
 0xbd9   : > { %p2082_p9 = pneg %p2081_p11 }
 0xbda   : > { %p2088_p12 = por %p2087_p5, %p2086_p13 }
 0xbdc   : > { %p2089_p2 = pnand %p2088_p12, %p2082_p9 }
 0xbde   : > { %2092 = shalt.err (!%p2089_p2)
}
 0xbdf   : > { %s2093_s19 = scalar_lea.hbm %s2782_s15, 128  ;;  %s2097_s25 = scalar_lea.hbm %s2849_s7, 256 }
 0xbe0   : > { %p2094_p4 = scmp.ne.s32.totalorder %s2782_s15, %s2093_s19  ;;  %p2098_p10 = scmp.lt.s32.totalorder %s2782_s15, %s2849_s7 }
 0xbe1   : > { %p2099_p0 = scmp.lt.s32.totalorder %s2097_s25, %s2093_s19 }
 0xbe2   : > { %p2095_p6 = pnand %p2094_p4, %p2899_p1 }
 0xbe3   : > { %p2100_p3 = por %p2099_p0, %p2098_p10 }
 0xbe4   : > { %p2096_p8 = pneg %p2095_p6 }
 0xbe6   : > { %p2101_p7 = pnand %p2100_p3, %p2096_p8 }
 0xbe8   : > { %2104 = shalt.err (!%p2101_p7)
}
 0xbe9   : > { %1793 = dma.vmem_to_hbm [thread:$0]  (%p2899_p1), %s2784_s2, 128, %s2782_s15, %s1455_s13, %s2202_s10, %s2202_s10, %s2203_s22  }
 0xbea PF: > { %s1500_s0 = sand.u32 1, %s2169_s8   ;;  %p2900_p11 = scmp.ne.s32.totalorder %s2871_s16, 0 }
 0xbeb   : > { %p2901_p9 = scmp.ge.s32.totalorder %s2181_s11, 2  ;;  %s1501_s17 = scalar_lea.sflag [#allocation8], %s1500_s0 }
 0xbed   : > { %p1808_p13 = pnand %p2901_p9, %p2900_p11 }
 0xbef   : > { %p1809_p5 = pneg %p1808_p13 }
 0xbf1   : > { %2148 = dma.done.wait (%p1809_p5), %s1501_s17, 128  }
 0xbf2   : > { %2150 = vsyncadd (%p1809_p5), %s1501_s17, 4294967168  ;;  %s2902_s20 = sld [smem:[#allocation21_spill]]  ;;  %p2905_p2 = pmov %p2901_p9 }
 0xbf3   : > { %s2903_s21 = sld [smem:[#allocation23_spill]] }
 0xbf8   : > { %s1509_s28 = sand.u32 1, %s2902_s20  }
 0xbf9   : > { %p2904_p12 = scmp.ne.s32.totalorder %s2903_s21, 0  ;;  %s1510_s10 = scalar_lea.sflag [#allocation14], %s1509_s28 }
 0xbfb   : > { %p1811_p4 = pnand %p2905_p2, %p2904_p12 }
 0xbfd   : > { %p1812_p1 = pneg %p1811_p4 }
 0xbff   : > { %2152 = dma.done.wait (%p1812_p1), %s1510_s10, 128  }
 0xc00   : > { %2154 = vsyncadd (%p1812_p1), %s1510_s10, 4294967168  ;;  %s2906_s11 = sld [smem:[#allocation24_spill]]  ;;  %s2909_s0 = smov %s2161_s29 }
 0xc01   : > { %s2907_s16 = sld [smem:[#allocation22_spill]]  ;;  %s2910_s29 = smov %s2165_s30 }
 0xc02   : > { %s2908_s10 = sld [smem:[#allocation25_spill]]  ;;  %s2911_s30 = smov %s2419_s24 }
 0xc03   : > { %s2912_s8 = smov %s2173_s9 }
 0xc06   : > { %p33_p6 = scmp.ge.s32.totalorder %s2906_s11, 4  }
 0xc07   : > { %s2913_s9 = smov %s2907_s16 }
 0xc08   :  { %35 = sbr.rel (!%p33_p6) target bundleno = 27 (0x1b), region = 143 }
 0xc0d   :  { %1515 = vsyncpa [#allocation7], 1 }
 0xc0e   :  { %1517 = vsyncpa [#allocation7 + $0x1], 1 }
 0xc0f   :  { %1518 = vsyncpa [#allocation10], 1 }
 0xc10   :  { %1520 = vsyncpa [#allocation10 + $0x1], 1 }
 0xc11   :  { %1521 = vsyncpa [#allocation8], 1 }
 0xc12   :  { %1523 = vsyncpa [#allocation8 + $0x1], 1 }
 0xc13   :  { %1524 = vsyncpa [#allocation14], 1 }
 0xc14   :  { %1526 = vsyncpa [#allocation14 + $0x1], 1 }

</bundles_post_ra>
